<compile_context>
chip_gen: v6e
topology: v6e:2x2x1
jax: 0.10.0
libtpu: 0.0.40
codegen_flags: <defaults>
</compile_context>

<pallas_src>
import jax
import jax.numpy as jnp
from jax.experimental import pallas as pl
from jax.experimental.pallas import tpu as pltpu

_BN_EPS = 1e-5
_LAYER_DIMS = [1024, 512, 256, 64]     # hidden widths of fc1..fc4
_M_TILE = 256                          # M rows per grid step for large batches


# ----------------------------- Fused Pallas kernel -----------------------------

def _fused_mlp_kernel(x_ref,
                      w1_ref, q1_ref, s1_ref,
                      w2_ref, q2_ref, s2_ref,
                      w3_ref, q3_ref, s3_ref,
                      w4_ref, q4_ref, s4_ref,
                      w5_ref, b5_ref,
                      o_ref):
    # x: (M, 128) f32; w1..w4: int8 (Fin, Fout); q*/s*: (1, Fout) f32
    # w5: (64, C) bf16; b5: (1, C) f32
    def hidden(h, w_ref, qscale_ref, shift_ref):
        # int8 -> bf16 is exact for |w| <= 127; MXU matmul with f32 accumulation.
        y = jnp.dot(h.astype(jnp.bfloat16), w_ref[...].astype(jnp.bfloat16),
                    preferred_element_type=jnp.float32)
        # per-output-channel dequant scale (BN folded) applied to the small output
        return jnp.maximum(y * qscale_ref[...] + shift_ref[...], 0.0)

    h = x_ref[...]
    h = hidden(h, w1_ref, q1_ref, s1_ref)   # 128  -> 1024
    h = hidden(h, w2_ref, q2_ref, s2_ref)   # 1024 -> 512
    h = hidden(h, w3_ref, q3_ref, s3_ref)   # 512  -> 256
    h = hidden(h, w4_ref, q4_ref, s4_ref)   # 256  -> 64

    # fc5 + softmax(dim=1)
    logits = jnp.dot(h.astype(jnp.bfloat16), w5_ref[...],
                     preferred_element_type=jnp.float32) + b5_ref[...]
    m = jnp.max(logits, axis=-1, keepdims=True)
    e = jnp.exp(logits - m)
    # EXACT divide: rows must sum to 1; the divide is free at this shape.
    o_ref[...] = e / jnp.sum(e, axis=-1, keepdims=True)


_VMEM_SPEC = pl.BlockSpec(memory_space=pltpu.MemorySpace.VMEM)


def _cost_estimate(batch, dims, flat_params):
    flops = 2 * batch * sum(dims[i] * dims[i + 1] for i in range(len(dims) - 1))
    weight_bytes = sum(int(p.size) * p.dtype.itemsize for p in flat_params)
    bytes_accessed = weight_bytes + batch * dims[0] * 4 + batch * dims[-1] * 4
    return pl.CostEstimate(flops=flops,
                           transcendentals=batch * dims[-1],
                           bytes_accessed=bytes_accessed)


def _fused_forward(x, flat_params, dims):
    B, D = x.shape
    C = dims[-1]
    out_shape = jax.ShapeDtypeStruct((B, C), jnp.float32)
    cost = _cost_estimate(B, dims, flat_params)

    if B <= _M_TILE:
        # Gridless: weights (+ tiny activations) fully VMEM-resident, one launch,
        # all input DMAs issued concurrently at full HBM bandwidth.
        return pl.pallas_call(
            _fused_mlp_kernel,
            out_shape=out_shape,
            in_specs=[_VMEM_SPEC] * (1 + len(flat_params)),
            out_specs=_VMEM_SPEC,
            cost_estimate=cost,
        )(x, *flat_params)

    # Large batch: tile M. Constant weight index_maps keep the weights resident
    # (one weight DMA per call, amortized over all M tiles); the parallel M axis
    # lets v7x's two TensorCores split the batch.
    grid = (pl.cdiv(B, _M_TILE),)
    w_specs = [pl.BlockSpec(p.shape, lambda i: (0, 0)) for p in flat_params]
    return pl.pallas_call(
        _fused_mlp_kernel,
        out_shape=out_shape,
        grid=grid,
        in_specs=[pl.BlockSpec((_M_TILE, D), lambda i: (i, 0))] + w_specs,
        out_specs=pl.BlockSpec((_M_TILE, C), lambda i: (i, 0)),
        compiler_params=pltpu.CompilerParams(dimension_semantics=("parallel",)),
        cost_estimate=cost,
    )(x, *flat_params)


@jax.jit
def module3_forward(params, x):
    flat, dims = [], [x.shape[1]]
    for layer in params["layers"]:
        flat += [layer["w_q"], layer["q_scale"], layer["shift"]]
        dims.append(layer["w_q"].shape[1])
    flat += [params["fc5"]["w"], params["fc5"]["b"]]
    dims.append(params["fc5"]["w"].shape[1])
    return _fused_forward(x, flat, dims)


# ----------------------------- Parameter setup -----------------------------

def init_params(key, input_len, n_classes):
    """Deterministic synthetic parameters mirroring Module3.__init__ shapes.

    Eval-mode BatchNorm + linear bias are folded:
        bn(x@W + b) = x @ (W*bn_scale) + ((b - mu)*bn_scale + beta)
    The folded weight is then symmetrically quantized to int8 per output
    channel; the dequant scale is carried separately and applied to the matmul
    output inside the kernel.

    Returns (kernel_params, f32_reference_params).
    """
    dims = [input_len] + _LAYER_DIMS + [n_classes]
    params = {"layers": [], "fc5": None}
    ref_f32 = {"layers": [], "fc5": None}
    keys = jax.random.split(key, 32)
    k = 0
    for li in range(4):
        fin, fout = dims[li], dims[li + 1]
        w = jax.random.normal(keys[k], (fin, fout), jnp.float32) / jnp.sqrt(fin); k += 1
        b = 0.01 * jax.random.normal(keys[k], (fout,), jnp.float32); k += 1
        gamma = 1.0 + 0.1 * jax.random.normal(keys[k], (fout,), jnp.float32); k += 1
        beta = 0.05 * jax.random.normal(keys[k], (fout,), jnp.float32); k += 1
        run_mean = 0.1 * jax.random.normal(keys[k], (fout,), jnp.float32); k += 1
        run_var = 1.0 + 0.1 * jax.random.uniform(keys[k], (fout,), jnp.float32); k += 1

        bn_scale = gamma / jnp.sqrt(run_var + _BN_EPS)
        shift = (b - run_mean) * bn_scale + beta
        w_folded = w * bn_scale[None, :]                          # f32, BN folded

        amax = jnp.maximum(jnp.max(jnp.abs(w_folded), axis=0), 1e-12)
        q_scale = amax / 127.0                                    # per out-channel
        w_q = jnp.clip(jnp.round(w_folded / q_scale[None, :]),
                       -127, 127).astype(jnp.int8)

        params["layers"].append({
            "w_q": w_q,                              # (fin, fout) int8
            "q_scale": q_scale.reshape(1, fout),     # (1, fout) f32
            "shift": shift.reshape(1, fout),         # (1, fout) f32
        })
        ref_f32["layers"].append({"w": w_folded, "shift": shift.reshape(1, fout)})

    fin, fout = dims[4], dims[5]
    w5 = jax.random.normal(keys[k], (fin, fout), jnp.float32) / jnp.sqrt(fin); k += 1
    b5 = 0.01 * jax.random.normal(keys[k], (fout,), jnp.float32); k += 1
    params["fc5"] = {"w": w5.astype(jnp.bfloat16), "b": b5.reshape(1, fout)}
    ref_f32["fc5"] = {"w": w5, "b": b5.reshape(1, fout)}
    return params, ref_f32


# ----------------------------- References (pure JAX) -----------------------------

def module3_forward_ref(params, x):
    """Pure-JAX reference using the SAME int8/bf16 numerics as the kernel."""
    out = x
    for layer in params["layers"]:
        y = jnp.dot(out.astype(jnp.bfloat16), layer["w_q"].astype(jnp.bfloat16),
                    preferred_element_type=jnp.float32)
        out = jnp.maximum(y * layer["q_scale"] + layer["shift"], 0.0)
    logits = jnp.dot(out.astype(jnp.bfloat16), params["fc5"]["w"],
                     preferred_element_type=jnp.float32) + params["fc5"]["b"]
    return jax.nn.softmax(logits, axis=1)


def module3_forward_f32_ref(ref_f32, x):
    """Full-precision reference == original fp32 Module3 (eval) semantics."""
    out = x
    for layer in ref_f32["layers"]:
        out = jnp.maximum(jnp.dot(out, layer["w"]) + layer["shift"], 0.0)
    logits = jnp.dot(out, ref_f32["fc5"]["w"]) + ref_f32["fc5"]["b"]
    return jax.nn.softmax(logits, axis=1)


# ----------------------------- Main -----------------------------

if __name__ == "__main__":
    key = jax.random.PRNGKey(0)
    k_param, k_x, k_xb = jax.random.split(key, 3)

    batch = 8
    input_len = 128
    n_classes = 10

    params, ref_f32_params = init_params(k_param, input_len, n_classes)

    # --- small-batch (gridless) path ---
    x = jax.random.normal(k_x, (batch, input_len), jnp.float32)
    out = jax.block_until_ready(module3_forward(params, x))
    assert out.shape == (batch, n_classes)

    ref = module3_forward_ref(params, x)
    assert jnp.allclose(out, ref, atol=1e-3, rtol=1e-3), "mismatch vs. same-numerics reference"
    # exact softmax divide -> rows sum to 1 up to f32 rounding
    assert jnp.allclose(jnp.sum(out, axis=1), jnp.ones((batch,)), atol=1e-4)
    # bound the accumulated int8 + bf16 error against the original fp32 math
    ref_full = module3_forward_f32_ref(ref_f32_params, x)
    assert jnp.max(jnp.abs(out - ref_full)) < 0.1, "quantization error vs fp32 original too large"

    # --- large-batch (M-tiled grid, weights resident across tiles) path ---
    big_batch = 512
    xb = jax.random.normal(k_xb, (big_batch, input_len), jnp.float32)
    outb = jax.block_until_ready(module3_forward(params, xb))
    assert outb.shape == (big_batch, n_classes)
    refb = module3_forward_ref(params, xb)
    assert jnp.allclose(outb, refb, atol=1e-3, rtol=1e-3), "mismatch on batch-grid path"
    assert jnp.allclose(jnp.sum(outb, axis=1), jnp.ones((big_batch,)), atol=1e-4)

    print("KERNEL_OK")
</pallas_src>

<mosaic_0001>
module attributes {stable_mosaic.version = 11 : i64} {
  func.func @_fused_mlp_kernel(%arg0: memref<8x128xf32, #tpu.memory_space<vmem>>, %arg1: memref<128x1024xi8, #tpu.memory_space<vmem>>, %arg2: memref<1x1024xf32, #tpu.memory_space<vmem>>, %arg3: memref<1x1024xf32, #tpu.memory_space<vmem>>, %arg4: memref<1024x512xi8, #tpu.memory_space<vmem>>, %arg5: memref<1x512xf32, #tpu.memory_space<vmem>>, %arg6: memref<1x512xf32, #tpu.memory_space<vmem>>, %arg7: memref<512x256xi8, #tpu.memory_space<vmem>>, %arg8: memref<1x256xf32, #tpu.memory_space<vmem>>, %arg9: memref<1x256xf32, #tpu.memory_space<vmem>>, %arg10: memref<256x64xi8, #tpu.memory_space<vmem>>, %arg11: memref<1x64xf32, #tpu.memory_space<vmem>>, %arg12: memref<1x64xf32, #tpu.memory_space<vmem>>, %arg13: memref<64x10xbf16, #tpu.memory_space<vmem>>, %arg14: memref<1x10xf32, #tpu.memory_space<vmem>>, %arg15: memref<8x10xf32, #tpu.memory_space<vmem>>) attributes {dimension_semantics = [], scalar_prefetch = 0 : i64, scratch_operands = 0 : i64, tpu.core_type = #tpu.core_type<tc>} {
    %c0 = arith.constant 0 : index
    %c0_0 = arith.constant 0 : index
    %0 = vector.load %arg0[%c0, %c0_0] : memref<8x128xf32, #tpu.memory_space<vmem>>, vector<8x128xf32>
    %1 = arith.truncf %0 : vector<8x128xf32> to vector<8x128xbf16>
    %c0_1 = arith.constant 0 : index
    %c0_2 = arith.constant 0 : index
    %2 = vector.load %arg1[%c0_1, %c0_2] : memref<128x1024xi8, #tpu.memory_space<vmem>>, vector<128x1024xi8>
    %3 = arith.sitofp %2 : vector<128x1024xi8> to vector<128x1024xbf16>
    %cst = arith.constant dense<0.000000e+00> : vector<8x1024xf32>
    %4 = tpu.matmul %1, %3, %cst {dimension_numbers = #tpu.dot_dimension_numbers<[1], [0], [0], [1], [0, 0, 1, 1], [], []>} : vector<8x128xbf16>, vector<128x1024xbf16>, vector<8x1024xf32> -> vector<8x1024xf32>
    %c0_3 = arith.constant 0 : index
    %c0_4 = arith.constant 0 : index
    %5 = vector.load %arg2[%c0_3, %c0_4] : memref<1x1024xf32, #tpu.memory_space<vmem>>, vector<1x1024xf32>
    %6 = vector.broadcast %5 : vector<1x1024xf32> to vector<8x1024xf32>
    %7 = arith.mulf %4, %6 : vector<8x1024xf32>
    %c0_5 = arith.constant 0 : index
    %c0_6 = arith.constant 0 : index
    %8 = vector.load %arg3[%c0_5, %c0_6] : memref<1x1024xf32, #tpu.memory_space<vmem>>, vector<1x1024xf32>
    %9 = vector.broadcast %8 : vector<1x1024xf32> to vector<8x1024xf32>
    %10 = arith.addf %7, %9 : vector<8x1024xf32>
    %cst_7 = arith.constant 0.000000e+00 : f32
    %11 = vector.broadcast %cst_7 : f32 to vector<8x1024xf32>
    %12 = arith.maximumf %10, %11 : vector<8x1024xf32>
    %13 = arith.truncf %12 : vector<8x1024xf32> to vector<8x1024xbf16>
    %c0_8 = arith.constant 0 : index
    %c0_9 = arith.constant 0 : index
    %14 = vector.load %arg4[%c0_8, %c0_9] : memref<1024x512xi8, #tpu.memory_space<vmem>>, vector<1024x512xi8>
    %15 = arith.sitofp %14 : vector<1024x512xi8> to vector<1024x512xbf16>
    %cst_10 = arith.constant dense<0.000000e+00> : vector<8x512xf32>
    %16 = tpu.matmul %13, %15, %cst_10 {dimension_numbers = #tpu.dot_dimension_numbers<[1], [0], [0], [1], [0, 0, 1, 1], [], []>} : vector<8x1024xbf16>, vector<1024x512xbf16>, vector<8x512xf32> -> vector<8x512xf32>
    %c0_11 = arith.constant 0 : index
    %c0_12 = arith.constant 0 : index
    %17 = vector.load %arg5[%c0_11, %c0_12] : memref<1x512xf32, #tpu.memory_space<vmem>>, vector<1x512xf32>
    %18 = vector.broadcast %17 : vector<1x512xf32> to vector<8x512xf32>
    %19 = arith.mulf %16, %18 : vector<8x512xf32>
    %c0_13 = arith.constant 0 : index
    %c0_14 = arith.constant 0 : index
    %20 = vector.load %arg6[%c0_13, %c0_14] : memref<1x512xf32, #tpu.memory_space<vmem>>, vector<1x512xf32>
    %21 = vector.broadcast %20 : vector<1x512xf32> to vector<8x512xf32>
    %22 = arith.addf %19, %21 : vector<8x512xf32>
    %cst_15 = arith.constant 0.000000e+00 : f32
    %23 = vector.broadcast %cst_15 : f32 to vector<8x512xf32>
    %24 = arith.maximumf %22, %23 : vector<8x512xf32>
    %25 = arith.truncf %24 : vector<8x512xf32> to vector<8x512xbf16>
    %c0_16 = arith.constant 0 : index
    %c0_17 = arith.constant 0 : index
    %26 = vector.load %arg7[%c0_16, %c0_17] : memref<512x256xi8, #tpu.memory_space<vmem>>, vector<512x256xi8>
    %27 = arith.sitofp %26 : vector<512x256xi8> to vector<512x256xbf16>
    %cst_18 = arith.constant dense<0.000000e+00> : vector<8x256xf32>
    %28 = tpu.matmul %25, %27, %cst_18 {dimension_numbers = #tpu.dot_dimension_numbers<[1], [0], [0], [1], [0, 0, 1, 1], [], []>} : vector<8x512xbf16>, vector<512x256xbf16>, vector<8x256xf32> -> vector<8x256xf32>
    %c0_19 = arith.constant 0 : index
    %c0_20 = arith.constant 0 : index
    %29 = vector.load %arg8[%c0_19, %c0_20] : memref<1x256xf32, #tpu.memory_space<vmem>>, vector<1x256xf32>
    %30 = vector.broadcast %29 : vector<1x256xf32> to vector<8x256xf32>
    %31 = arith.mulf %28, %30 : vector<8x256xf32>
    %c0_21 = arith.constant 0 : index
    %c0_22 = arith.constant 0 : index
    %32 = vector.load %arg9[%c0_21, %c0_22] : memref<1x256xf32, #tpu.memory_space<vmem>>, vector<1x256xf32>
    %33 = vector.broadcast %32 : vector<1x256xf32> to vector<8x256xf32>
    %34 = arith.addf %31, %33 : vector<8x256xf32>
    %cst_23 = arith.constant 0.000000e+00 : f32
    %35 = vector.broadcast %cst_23 : f32 to vector<8x256xf32>
    %36 = arith.maximumf %34, %35 : vector<8x256xf32>
    %37 = arith.truncf %36 : vector<8x256xf32> to vector<8x256xbf16>
    %c0_24 = arith.constant 0 : index
    %c0_25 = arith.constant 0 : index
    %38 = vector.load %arg10[%c0_24, %c0_25] : memref<256x64xi8, #tpu.memory_space<vmem>>, vector<256x64xi8>
    %39 = arith.sitofp %38 : vector<256x64xi8> to vector<256x64xbf16>
    %cst_26 = arith.constant dense<0.000000e+00> : vector<8x64xf32>
    %40 = tpu.matmul %37, %39, %cst_26 {dimension_numbers = #tpu.dot_dimension_numbers<[1], [0], [0], [1], [0, 0, 1, 1], [], []>} : vector<8x256xbf16>, vector<256x64xbf16>, vector<8x64xf32> -> vector<8x64xf32>
    %c0_27 = arith.constant 0 : index
    %c0_28 = arith.constant 0 : index
    %41 = vector.load %arg11[%c0_27, %c0_28] : memref<1x64xf32, #tpu.memory_space<vmem>>, vector<1x64xf32>
    %42 = vector.broadcast %41 : vector<1x64xf32> to vector<8x64xf32>
    %43 = arith.mulf %40, %42 : vector<8x64xf32>
    %c0_29 = arith.constant 0 : index
    %c0_30 = arith.constant 0 : index
    %44 = vector.load %arg12[%c0_29, %c0_30] : memref<1x64xf32, #tpu.memory_space<vmem>>, vector<1x64xf32>
    %45 = vector.broadcast %44 : vector<1x64xf32> to vector<8x64xf32>
    %46 = arith.addf %43, %45 : vector<8x64xf32>
    %cst_31 = arith.constant 0.000000e+00 : f32
    %47 = vector.broadcast %cst_31 : f32 to vector<8x64xf32>
    %48 = arith.maximumf %46, %47 : vector<8x64xf32>
    %49 = arith.truncf %48 : vector<8x64xf32> to vector<8x64xbf16>
    %c0_32 = arith.constant 0 : index
    %c0_33 = arith.constant 0 : index
    %50 = vector.load %arg13[%c0_32, %c0_33] : memref<64x10xbf16, #tpu.memory_space<vmem>>, vector<64x10xbf16>
    %cst_34 = arith.constant dense<0.000000e+00> : vector<8x10xf32>
    %51 = tpu.matmul %49, %50, %cst_34 {dimension_numbers = #tpu.dot_dimension_numbers<[1], [0], [0], [1], [0, 0, 1, 1], [], []>} : vector<8x64xbf16>, vector<64x10xbf16>, vector<8x10xf32> -> vector<8x10xf32>
    %c0_35 = arith.constant 0 : index
    %c0_36 = arith.constant 0 : index
    %52 = vector.load %arg14[%c0_35, %c0_36] : memref<1x10xf32, #tpu.memory_space<vmem>>, vector<1x10xf32>
    %53 = vector.broadcast %52 : vector<1x10xf32> to vector<8x10xf32>
    %54 = arith.addf %51, %53 : vector<8x10xf32>
    %cst_37 = arith.constant dense<0xFF800000> : vector<8xf32>
    %55 = vector.multi_reduction <maximumf>, %54, %cst_37 [1] : vector<8x10xf32> to vector<8xf32>
    %56 = vector.shape_cast %55 : vector<8xf32> to vector<8x1xf32>
    %57 = vector.broadcast %56 : vector<8x1xf32> to vector<8x10xf32>
    %58 = arith.subf %54, %57 : vector<8x10xf32>
    %59 = math.exp %58 : vector<8x10xf32>
    %cst_38 = arith.constant dense<0.000000e+00> : vector<8xf32>
    %60 = vector.multi_reduction <add>, %59, %cst_38 [1] : vector<8x10xf32> to vector<8xf32>
    %61 = vector.shape_cast %60 : vector<8xf32> to vector<8x1xf32>
    %62 = vector.broadcast %61 : vector<8x1xf32> to vector<8x10xf32>
    %63 = arith.divf %59, %62 : vector<8x10xf32>
    %c0_39 = arith.constant 0 : index
    %c0_40 = arith.constant 0 : index
    %64 = vector.load %arg15[%c0_39, %c0_40] : memref<8x10xf32, #tpu.memory_space<vmem>>, vector<8x10xf32>
    tpu.vector_store %arg15[%c0_39, %c0_40], %63 {strides = array<i32>} : memref<8x10xf32, #tpu.memory_space<vmem>>, vector<8x10xf32>,
    return
  }
}

</mosaic_0001>

<bundles_post_ra>
// kernel: module3_forward.1
= control target key start
LH: loop header
LB: loop body
LE: loop exit
PB: predicated region body
PF: predicated region fallthrough
CT: control target
= control target key end

     0   :  { %20 = vsyncpa [#allocation3], 0  ;;  %s2122_s0 = inlined_call_operand.vmem [shape: f32[8,128], index: 0, kind: input, shape index: {}]   ;;  %s2123_s1 = inlined_call_operand.hbm [shape: s8[128,1024], index: 1, kind: input, shape index: {}]   ;;  %s2124_s2 = inlined_call_operand.vmem [shape: f32[1,1024], index: 2, kind: input, shape index: {}]   ;;  %s2125_s3 = inlined_call_operand.vmem [shape: f32[1,1024], index: 3, kind: input, shape index: {}]   ;;  %s2126_s4 = inlined_call_operand.hbm [shape: s8[1024,512], index: 4, kind: input, shape index: {}]   ;;  %s2127_s5 = inlined_call_operand.vmem [shape: f32[1,512], index: 5, kind: input, shape index: {}]   ;;  %s2128_s6 = inlined_call_operand.vmem [shape: f32[1,512], index: 6, kind: input, shape index: {}]   ;;  %s2129_s7 = inlined_call_operand.hbm [shape: s8[512,256], index: 7, kind: input, shape index: {}]   ;;  %s2130_s8 = inlined_call_operand.vmem [shape: f32[1,256], index: 8, kind: input, shape index: {}]   ;;  %s2131_s9 = inlined_call_operand.vmem [shape: f32[1,256], index: 9, kind: input, shape index: {}]   ;;  %s2132_s10 = inlined_call_operand.vmem [shape: s8[256,64], index: 10, kind: input, shape index: {}]   ;;  %s2133_s11 = inlined_call_operand.vmem [shape: f32[1,64], index: 11, kind: input, shape index: {}]   ;;  %s2134_s12 = inlined_call_operand.vmem [shape: f32[1,64], index: 12, kind: input, shape index: {}]   ;;  %s2135_s13 = inlined_call_operand.vmem [shape: bf16[64,10], index: 13, kind: input, shape index: {}]   ;;  %s2136_s14 = inlined_call_operand.vmem [shape: f32[1,10], index: 14, kind: input, shape index: {}]   ;;  %s2137_s15 = inlined_call_operand.hbm [shape: f32[8,10], index: 15, kind: output, shape index: {}]  }
   0x1   :  { %21 = vsyncpa [#allocation6], 0 }
   0x2   :  { %22 = vsyncpa [#allocation4], 0  ;;  %s1801_s18 = smov [#allocation5]  }
   0x3   :  { %s46_s19 = sshll.u32 %s1801_s18, 4  ;;  %s47_s19 = int_to_ptr.vmem [resolvable:$true] %s46_s19 }
   0x4   :  { %s1723_s20 = scalar_lea.vmem %s47_s19, 16384  ;;  %p1728_p1 = scmp.lt.s32.totalorder %s47_s19, %s47_s19 }
   0x5   :  { %p1724_p0 = scmp.ne.s32.totalorder %s47_s19, %s1723_s20  ;;  %p1729_p2 = scmp.lt.s32.totalorder %s1723_s20, %s1723_s20 }
   0x7   :  { %p1730_p3 = por %p1729_p2, %p1728_p1 }
   0x9   :  { %p1731_p4 = pnand %p1730_p3, %p1724_p0 }
   0xb   :  { %1734 = shalt.err (!%p1731_p4)
}
   0xc   :  { %s1802_s21 = smov 512   ;;  %s1803_s22 = smov 32  }
   0xd   :  { %52 = dma.hbm_to_vmem [thread:$0]  %s2126_s4, 16384, %s47_s19, [#allocation6], %s1802_s21, %s1802_s21, %s1803_s22  }
   0xe   :  { %s1804_s25 = smov [#allocation2]  }
   0xf   :  { %s30_s26 = sshll.u32 %s1804_s25, 4  ;;  %s31_s26 = int_to_ptr.vmem [resolvable:$true] %s30_s26 }
  0x10   :  { %s1743_s27 = scalar_lea.vmem %s31_s26, 4096  ;;  %p1748_p6 = scmp.lt.s32.totalorder %s31_s26, %s31_s26 }
  0x11   :  { %p1744_p5 = scmp.ne.s32.totalorder %s31_s26, %s1743_s27  ;;  %p1749_p7 = scmp.lt.s32.totalorder %s1743_s27, %s1743_s27 }
  0x13   :  { %p1750_p8 = por %p1749_p7, %p1748_p6 }
  0x15   :  { %p1751_p9 = pnand %p1750_p8, %p1744_p5 }
  0x17   :  { %1754 = shalt.err (!%p1751_p9)
}
  0x18   :  { %s1805_s28 = smov 1024   ;;  %s1806_s29 = smov 64  }
  0x19   :  { %36 = dma.hbm_to_vmem [thread:$0]  %s2123_s1, 4096, %s31_s26, [#allocation3], %s1805_s28, %s1805_s28, %s1806_s29  }
  0x1a   :  { %s1807_s17 = smov [#allocation7]  }
  0x1b   :  { %s62_s18 = sshll.u32 %s1807_s17, 4  ;;  %s63_s18 = int_to_ptr.vmem [resolvable:$true] %s62_s18 }
  0x1c   :  { %s1763_s4 = scalar_lea.vmem %s63_s18, 4096  ;;  %p1768_p11 = scmp.lt.s32.totalorder %s63_s18, %s63_s18 }
  0x1d   :  { %p1764_p10 = scmp.ne.s32.totalorder %s63_s18, %s1763_s4  ;;  %p1769_p12 = scmp.lt.s32.totalorder %s1763_s4, %s1763_s4 }
  0x1f   :  { %p1770_p13 = por %p1769_p12, %p1768_p11 }
  0x21   :  { %p1771_p0 = pnand %p1770_p13, %p1764_p10 }
  0x23   :  { %1774 = shalt.err (!%p1771_p0)
}
  0x24   :  { %s1808_s19 = smov 256   ;;  %s1809_s20 = smov 16  }
  0x25   :  { %68 = dma.hbm_to_vmem [thread:$0]  %s2129_s7, 4096, %s63_s18, [#allocation6], %s1808_s19, %s1808_s19, %s1809_s20  }
  0x26   :  { %1795 = dma.done.wait [#allocation3], 4096  }
  0x27   :  { %1796 = vsyncadd [#allocation3], 4294963200 }
  0x28   :  { %1797 = dma.done.wait [#allocation6], 20480  }
  0x29   :  { %1798 = vsyncadd [#allocation6], 4294946816  ;;  %v1810_v0 = vmov 0   ;;  %v120_v1 = vld [vmem:[#allocation2 + $0xc8] sm:$0xff]  ;;  %v122_v2 = vld [vmem:[#allocation2 + $0xd8] sm:$0xff]  ;;  %vm1812_vm0 = vmmov 0  }
  0x2a   :  { %223 = vmatprep.mubr.bf16.mxu0 %v1810_v0  ;;  %264 = vmatprep.mubr.bf16.mxu1 %v1810_v0  ;;  %v119_v3 = vld [vmem:[#allocation2 + $0xc0] sm:$0xff]  ;;  %v176_v4 = vunpack.c.l.s8.bf16 %v120_v1  ;;  %v184_v5 = vunpack.c.h.s8.bf16 %v120_v1  ;;  %v178_v6 = vunpack.c.l.s8.bf16 %v122_v2  ;;  %v186_v7 = vunpack.c.h.s8.bf16 %v122_v2  ;;  %v121_v8 = vld [vmem:[#allocation2 + $0xd0] sm:$0xff]  ;;  %v112_v11 = vld [vmem:[#allocation2 + $0x88] sm:$0xff] }
  0x2b   :  { %v183_v9 = vunpack.c.h.s8.bf16 %v119_v3  ;;  %v185_v10 = vunpack.c.h.s8.bf16 %v121_v8  ;;  %v114_v12 = vld [vmem:[#allocation2 + $0x98] sm:$0xff]  ;;  %v175_v13 = vunpack.c.l.s8.bf16 %v119_v3  ;;  %v177_v14 = vunpack.c.l.s8.bf16 %v121_v8  ;;  %v111_v17 = vld [vmem:[#allocation2 + $0x80] sm:$0xff]  ;;  %v113_v18 = vld [vmem:[#allocation2 + $0x90] sm:$0xff] }
  0x2c   :  { %191 = vmatprep.subr.bf16.mxu0 %v184_v5  ;;  %232 = vmatprep.subr.bf16.mxu1 %v186_v7  ;;  %v168_v15 = vunpack.c.h.s8.bf16 %v112_v11  ;;  %v170_v16 = vunpack.c.h.s8.bf16 %v114_v12  ;;  %v167_v19 = vunpack.c.h.s8.bf16 %v111_v17  ;;  %v169_v20 = vunpack.c.h.s8.bf16 %v113_v18  ;;  %v104_v23 = vld [vmem:[#allocation2 + $0x48] sm:$0xff]  ;;  %v106_v24 = vld [vmem:[#allocation2 + $0x58] sm:$0xff]  ;;  %v103_v29 = vld [vmem:[#allocation2 + $0x40] sm:$0xff] }
  0x2d   :  { %192 = vmatpush1.bf16.msra.mxu0 %v183_v9  ;;  %233 = vmatpush1.bf16.msra.mxu1 %v185_v10  ;;  %v160_v21 = vunpack.c.l.s8.bf16 %v112_v11  ;;  %v162_v22 = vunpack.c.l.s8.bf16 %v114_v12  ;;  %v159_v25 = vunpack.c.l.s8.bf16 %v111_v17  ;;  %v161_v26 = vunpack.c.l.s8.bf16 %v113_v18  ;;  %v105_v30 = vld [vmem:[#allocation2 + $0x50] sm:$0xff]  ;;  %v96_v35 = vld [vmem:[#allocation2 + $0x8] sm:$0xff]  ;;  %v98_v36 = vld [vmem:[#allocation2 + $0x18] sm:$0xff] }
  0x2e   :  { %193 = vmatprep.subr.bf16.mxu0 %v176_v4  ;;  %234 = vmatprep.subr.bf16.mxu1 %v178_v6  ;;  %v152_v27 = vunpack.c.h.s8.bf16 %v104_v23  ;;  %v154_v28 = vunpack.c.h.s8.bf16 %v106_v24  ;;  %v151_v31 = vunpack.c.h.s8.bf16 %v103_v29  ;;  %v153_v32 = vunpack.c.h.s8.bf16 %v105_v30  ;;  %v95_v37 = vld [vmem:[#allocation2] sm:$0xff]  ;;  %v97_v40 = vld [vmem:[#allocation2 + $0x10] sm:$0xff]  ;;  %v124_v47 = vld [vmem:[#allocation2 + $0xe8] sm:$0xff] }
  0x2f   :  { %v144_v33 = vunpack.c.l.s8.bf16 %v104_v23  ;;  %v146_v34 = vunpack.c.l.s8.bf16 %v106_v24  ;;  %v143_v38 = vunpack.c.l.s8.bf16 %v103_v29  ;;  %v145_v39 = vunpack.c.l.s8.bf16 %v105_v30  ;;  %v126_v48 = vld [vmem:[#allocation2 + $0xf8] sm:$0xff]  ;;  %v93_v51 = vld [vmem:[%s2122_s0] sm:$0xff]  ;;  %v125_v55 = vld [vmem:[#allocation2 + $0xf0] sm:$0xff] }
  0x30   :  { %v136_v41 = vunpack.c.h.s8.bf16 %v96_v35  ;;  %v138_v42 = vunpack.c.h.s8.bf16 %v98_v36  ;;  %v135_v43 = vunpack.c.h.s8.bf16 %v95_v37  ;;  %v137_v44 = vunpack.c.h.s8.bf16 %v97_v40  ;;  %v123_v53 = vld [vmem:[#allocation2 + $0xe0] sm:$0xff]  ;;  %v116_v61 = vld [vmem:[#allocation2 + $0xa8] sm:$0xff]  ;;  %v118_v62 = vld [vmem:[#allocation2 + $0xb8] sm:$0xff] }
  0x31   :  { %194 = vmatpush1.bf16.msra.mxu0 %v175_v13  ;;  %235 = vmatpush1.bf16.msra.mxu1 %v177_v14  ;;  %v128_v45 = vunpack.c.l.s8.bf16 %v96_v35  ;;  %v130_v46 = vunpack.c.l.s8.bf16 %v98_v36  ;;  %v127_v49 = vunpack.c.l.s8.bf16 %v95_v37  ;;  %v129_v50 = vunpack.c.l.s8.bf16 %v97_v40  ;;  %v115_v3 = vld [vmem:[#allocation2 + $0xa0] sm:$0xff]  ;;  %v117_v5 = vld [vmem:[#allocation2 + $0xb0] sm:$0xff]  ;;  %v108_v10 = vld [vmem:[#allocation2 + $0x68] sm:$0xff] }
  0x32   :  { %195 = vmatprep.subr.bf16.mxu0 %v168_v15  ;;  %236 = vmatprep.subr.bf16.mxu1 %v170_v16  ;;  %v188_v52 = vunpack.c.h.s8.bf16 %v124_v47  ;;  %v190_v54 = vunpack.c.h.s8.bf16 %v126_v48  ;;  %v1908_v56 = vpack.c.bf16 %v93_v51, %v93_v51  ;;  %v187_v57 = vunpack.c.h.s8.bf16 %v123_v53  ;;  %v110_v11 = vld [vmem:[#allocation2 + $0x78] sm:$0xff]  ;;  %v107_v15 = vld [vmem:[#allocation2 + $0x60] sm:$0xff] }
  0x33   :  { %v189_v58 = vunpack.c.h.s8.bf16 %v125_v55  ;;  %v180_v59 = vunpack.c.l.s8.bf16 %v124_v47  ;;  %v182_v60 = vunpack.c.l.s8.bf16 %v126_v48  ;;  %v179_v63 = vunpack.c.l.s8.bf16 %v123_v53  ;;  %v515_v40 = vld [vmem:[#allocation5 + $0x160] sm:$0xff] }
  0x34   :  { %v181_v1 = vunpack.c.l.s8.bf16 %v125_v55  ;;  %v172_v2 = vunpack.c.h.s8.bf16 %v116_v61  ;;  %v174_v4 = vunpack.c.h.s8.bf16 %v118_v62  ;;  %v171_v6 = vunpack.c.h.s8.bf16 %v115_v3  ;;  %v479_v51 = vld [vmem:[#allocation5 + $0x40] sm:$0xff] }
  0x35   :  { %196 = vmatpush1.bf16.msra.mxu0 %v167_v19  ;;  %237 = vmatpush1.bf16.msra.mxu1 %v169_v20  ;;  %v173_v7 = vunpack.c.h.s8.bf16 %v117_v5  ;;  %v164_v8 = vunpack.c.l.s8.bf16 %v116_v61  ;;  %v166_v9 = vunpack.c.l.s8.bf16 %v118_v62  ;;  %v163_v12 = vunpack.c.l.s8.bf16 %v115_v3 }
  0x36   :  { %197 = vmatprep.subr.bf16.mxu0 %v160_v21  ;;  %238 = vmatprep.subr.bf16.mxu1 %v162_v22  ;;  %v165_v13 = vunpack.c.l.s8.bf16 %v117_v5  ;;  %v156_v14 = vunpack.c.h.s8.bf16 %v108_v10  ;;  %v158_v16 = vunpack.c.h.s8.bf16 %v110_v11  ;;  %v155_v17 = vunpack.c.h.s8.bf16 %v107_v15  ;;  %v100_v21 = vld [vmem:[#allocation2 + $0x28] sm:$0xff]  ;;  %v102_v22 = vld [vmem:[#allocation2 + $0x38] sm:$0xff] }
  0x37   :  { %v148_v19 = vunpack.c.l.s8.bf16 %v108_v10  ;;  %v150_v20 = vunpack.c.l.s8.bf16 %v110_v11  ;;  %v147_v23 = vunpack.c.l.s8.bf16 %v107_v15  ;;  %v687_v48 = vunpack.c.l.s8.bf16 %v515_v40 }
  0x38   :  { %v619_v53 = vunpack.c.h.s8.bf16 %v479_v51  ;;  %vm1574_vm1 = vcmask 523264   ;;  %vm1618_vm2 = vcmask 80896  }
  0x39   :  { %198 = vmatpush1.bf16.msra.mxu0 %v159_v25  ;;  %239 = vmatpush1.bf16.msra.mxu1 %v161_v26  ;;  %v140_v25 = vunpack.c.h.s8.bf16 %v100_v21  ;;  %v99_v26 = vld [vmem:[#allocation2 + $0x20] sm:$0xff] }
  0x3a   :  { %199 = vmatprep.subr.bf16.mxu0 %v152_v27  ;;  %240 = vmatprep.subr.bf16.mxu1 %v154_v28  ;;  %v142_v27 = vunpack.c.h.s8.bf16 %v102_v22  ;;  %v101_v28 = vld [vmem:[#allocation2 + $0x30] sm:$0xff]  ;;  %v139_v29 = vunpack.c.h.s8.bf16 %v99_v26  ;;  %v131_v35 = vunpack.c.l.s8.bf16 %v99_v26 }
  0x3b   :  { %v141_v30 = vunpack.c.h.s8.bf16 %v101_v28  ;;  %v133_v36 = vunpack.c.l.s8.bf16 %v101_v28 }
  0x3d   :  { %200 = vmatpush1.bf16.msra.mxu0 %v151_v31  ;;  %241 = vmatpush1.bf16.msra.mxu1 %v153_v32  ;;  %v132_v31 = vunpack.c.l.s8.bf16 %v100_v21  ;;  %v134_v32 = vunpack.c.l.s8.bf16 %v102_v22 }
  0x3e   :  { %201 = vmatprep.subr.bf16.mxu0 %v144_v33  ;;  %242 = vmatprep.subr.bf16.mxu1 %v146_v34  ;;  %v484_v33 = vld [vmem:[#allocation5 + $0x68] sm:$0xff] }
  0x3f   :  { %v516_v34 = vld [vmem:[#allocation5 + $0x168] sm:$0xff]  ;;  %v628_v37 = vunpack.c.h.s8.bf16 %v484_v33 }
  0x41   :  { %202 = vmatpush1.bf16.msra.mxu0 %v143_v38  ;;  %243 = vmatpush1.bf16.msra.mxu1 %v145_v39  ;;  %v692_v38 = vunpack.c.h.s8.bf16 %v516_v34  ;;  %v483_v39 = vld [vmem:[#allocation5 + $0x60] sm:$0xff] }
  0x42   :  { %203 = vmatprep.subr.bf16.mxu0 %v136_v41  ;;  %244 = vmatprep.subr.bf16.mxu1 %v138_v42  ;;  %v627_v41 = vunpack.c.h.s8.bf16 %v483_v39  ;;  %v691_v42 = vunpack.c.h.s8.bf16 %v515_v40  ;;  %v623_v47 = vunpack.c.l.s8.bf16 %v483_v39 }
  0x45   :  { %204 = vmatpush1.bf16.msra.mxu0 %v135_v43  ;;  %245 = vmatpush1.bf16.msra.mxu1 %v137_v44  ;;  %v624_v43 = vunpack.c.l.s8.bf16 %v484_v33  ;;  %v688_v44 = vunpack.c.l.s8.bf16 %v516_v34 }
  0x46   :  { %205 = vmatprep.subr.bf16.mxu0 %v128_v45  ;;  %246 = vmatprep.subr.bf16.mxu1 %v130_v46  ;;  %v480_v45 = vld [vmem:[#allocation5 + $0x48] sm:$0xff] }
  0x47   :  { %v512_v46 = vld [vmem:[#allocation5 + $0x148] sm:$0xff]  ;;  %v616_v55 = vunpack.c.l.s8.bf16 %v480_v45 }
  0x49   :  { %206 = vmatpush1.bf16.msra.mxu0 %v127_v49  ;;  %247 = vmatpush1.bf16.msra.mxu1 %v129_v50  ;;  %v620_v49 = vunpack.c.h.s8.bf16 %v480_v45  ;;  %v684_v50 = vunpack.c.h.s8.bf16 %v512_v46 }
  0x4a   :  { %273 = vmatprep.subr.bf16.mxu0 %v188_v52  ;;  %314 = vmatprep.subr.bf16.mxu1 %v190_v54  ;;  %v511_v52 = vld [vmem:[#allocation5 + $0x140] sm:$0xff] }
  0x4b   :  { %v683_v54 = vunpack.c.h.s8.bf16 %v511_v52 }
  0x4c   :  { %224 = vmatmul.mubr.bf16.vlgmr.msra.gmra.mxu0 %v1908_v56  ;;  %265 = vmatmul.mubr.bf16.vlgmr.msra.gmra.mxu1 %v1908_v56 }
  0x4d   :  { %274 = vmatpush1.bf16.msra.mxu0 %v187_v57  ;;  %315 = vmatpush1.bf16.msra.mxu1 %v189_v58  ;;  %v680_v57 = vunpack.c.l.s8.bf16 %v512_v46  ;;  %v476_v58 = vld [vmem:[#allocation5 + $0x28] sm:$0xff] }
  0x4e   :  { %275 = vmatprep.subr.bf16.mxu0 %v180_v59  ;;  %316 = vmatprep.subr.bf16.mxu1 %v182_v60  ;;  %v615_v59 = vunpack.c.l.s8.bf16 %v479_v51  ;;  %v679_v60 = vunpack.c.l.s8.bf16 %v511_v52  ;;  %v612_v61 = vunpack.c.h.s8.bf16 %v476_v58 }
  0x4f   :  { %305 = vmatprep.mubr.bf16.mxu0 %v1810_v0  ;;  %346 = vmatprep.mubr.bf16.mxu1 %v1810_v0  ;;  %v109_v0 = vld [vmem:[#allocation2 + $0x70] sm:$0xff] }
  0x50   :  { %v157_v18 = vunpack.c.h.s8.bf16 %v109_v0  ;;  %v149_v24 = vunpack.c.l.s8.bf16 %v109_v0 }
  0x51   :  { %276 = vmatpush1.bf16.msra.mxu0 %v179_v63  ;;  %317 = vmatpush1.bf16.msra.mxu1 %v181_v1  ;;  %v475_v63 = vld [vmem:[#allocation5 + $0x20] sm:$0xff] }
  0x52   :  { %277 = vmatprep.subr.bf16.mxu0 %v172_v2  ;;  %318 = vmatprep.subr.bf16.mxu1 %v174_v4  ;;  %v507_v1 = vld [vmem:[#allocation5 + $0x120] sm:$0xff]  ;;  %v611_v2 = vunpack.c.h.s8.bf16 %v475_v63  ;;  %v608_v4 = vunpack.c.l.s8.bf16 %v476_v58 }
  0x53   :  { %v675_v3 = vunpack.c.h.s8.bf16 %v507_v1 }
  0x55   :  { %278 = vmatpush1.bf16.msra.mxu0 %v171_v6  ;;  %319 = vmatpush1.bf16.msra.mxu1 %v173_v7  ;;  %v472_v6 = vld [vmem:[#allocation5 + $0x8] sm:$0xff] }
  0x56   :  { %279 = vmatprep.subr.bf16.mxu0 %v164_v8  ;;  %320 = vmatprep.subr.bf16.mxu1 %v166_v9  ;;  %v504_v7 = vld [vmem:[#allocation5 + $0x108] sm:$0xff]  ;;  %v607_v8 = vunpack.c.l.s8.bf16 %v475_v63  ;;  %v671_v9 = vunpack.c.l.s8.bf16 %v507_v1  ;;  %v604_v10 = vunpack.c.h.s8.bf16 %v472_v6 }
  0x57   :  { %v668_v11 = vunpack.c.h.s8.bf16 %v504_v7  ;;  %v664_v0 = vunpack.c.l.s8.bf16 %v504_v7 }
  0x59   :  { %280 = vmatpush1.bf16.msra.mxu0 %v163_v12  ;;  %321 = vmatpush1.bf16.msra.mxu1 %v165_v13  ;;  %v471_v12 = vld [vmem:[#allocation5] sm:$0xff] }
  0x5a   :  { %281 = vmatprep.subr.bf16.mxu0 %v156_v14  ;;  %322 = vmatprep.subr.bf16.mxu1 %v158_v16  ;;  %v503_v13 = vld [vmem:[#allocation5 + $0x100] sm:$0xff]  ;;  %v603_v14 = vunpack.c.h.s8.bf16 %v471_v12  ;;  %v600_v16 = vunpack.c.l.s8.bf16 %v472_v6 }
  0x5b   :  { %v667_v15 = vunpack.c.h.s8.bf16 %v503_v13 }
  0x5d   :  { %282 = vmatpush1.bf16.msra.mxu0 %v155_v17  ;;  %323 = vmatpush1.bf16.msra.mxu1 %v157_v18  ;;  %v500_v17 = vld [vmem:[#allocation5 + $0xe8] sm:$0xff] }
  0x5e   :  { %283 = vmatprep.subr.bf16.mxu0 %v148_v19  ;;  %324 = vmatprep.subr.bf16.mxu1 %v150_v20  ;;  %v532_v18 = vld [vmem:[#allocation5 + $0x1e8] sm:$0xff]  ;;  %v599_v19 = vunpack.c.l.s8.bf16 %v471_v12  ;;  %v663_v20 = vunpack.c.l.s8.bf16 %v503_v13  ;;  %v660_v21 = vunpack.c.h.s8.bf16 %v500_v17  ;;  %v1933_v12 = vld [vmem:[%s2125_s3] sm:$0xff] }
  0x5f   :  { %v724_v22 = vunpack.c.h.s8.bf16 %v532_v18  ;;  %v720_v28 = vunpack.c.l.s8.bf16 %v532_v18 }
  0x61   :  { %284 = vmatpush1.bf16.msra.mxu0 %v147_v23  ;;  %325 = vmatpush1.bf16.msra.mxu1 %v149_v24  ;;  %v499_v23 = vld [vmem:[#allocation5 + $0xe0] sm:$0xff] }
  0x62   :  { %285 = vmatprep.subr.bf16.mxu0 %v140_v25  ;;  %326 = vmatprep.subr.bf16.mxu1 %v142_v27  ;;  %v531_v24 = vld [vmem:[#allocation5 + $0x1e0] sm:$0xff]  ;;  %v659_v25 = vunpack.c.h.s8.bf16 %v499_v23  ;;  %v656_v27 = vunpack.c.l.s8.bf16 %v500_v17 }
  0x63   :  { %v723_v26 = vunpack.c.h.s8.bf16 %v531_v24 }
  0x65   :  { %286 = vmatpush1.bf16.msra.mxu0 %v139_v29  ;;  %327 = vmatpush1.bf16.msra.mxu1 %v141_v30  ;;  %v496_v29 = vld [vmem:[#allocation5 + $0xc8] sm:$0xff] }
  0x66   :  { %287 = vmatprep.subr.bf16.mxu0 %v132_v31  ;;  %328 = vmatprep.subr.bf16.mxu1 %v134_v32  ;;  %v528_v30 = vld [vmem:[#allocation5 + $0x1c8] sm:$0xff]  ;;  %v655_v31 = vunpack.c.l.s8.bf16 %v499_v23  ;;  %v719_v32 = vunpack.c.l.s8.bf16 %v531_v24  ;;  %v652_v33 = vunpack.c.h.s8.bf16 %v496_v29  ;;  %v648_v39 = vunpack.c.l.s8.bf16 %v496_v29 }
  0x67   :  { %v716_v34 = vunpack.c.h.s8.bf16 %v528_v30  ;;  %v712_v40 = vunpack.c.l.s8.bf16 %v528_v30 }
  0x69   :  { %288 = vmatpush1.bf16.msra.mxu0 %v131_v35  ;;  %329 = vmatpush1.bf16.msra.mxu1 %v133_v36  ;;  %v495_v35 = vld [vmem:[#allocation5 + $0xc0] sm:$0xff] }
  0x6a   :  { %855 = vmatprep.subr.bf16.mxu0 %v628_v37  ;;  %896 = vmatprep.subr.bf16.mxu1 %v692_v38  ;;  %v527_v36 = vld [vmem:[#allocation5 + $0x1c0] sm:$0xff]  ;;  %v651_v37 = vunpack.c.h.s8.bf16 %v495_v35 }
  0x6b   :  { %v715_v38 = vunpack.c.h.s8.bf16 %v527_v36 }
  0x6c   :  { %306 = vmatmul.mubr.bf16.vlgmr.msra.gmra.mxu0 %v1908_v56  ;;  %347 = vmatmul.mubr.bf16.vlgmr.msra.gmra.mxu1 %v1908_v56  ;;  %v508_v56 = vld [vmem:[#allocation5 + $0x128] sm:$0xff] }
  0x6d   :  { %856 = vmatpush1.bf16.msra.mxu0 %v627_v41  ;;  %897 = vmatpush1.bf16.msra.mxu1 %v691_v42  ;;  %v676_v62 = vunpack.c.h.s8.bf16 %v508_v56  ;;  %v672_v5 = vunpack.c.l.s8.bf16 %v508_v56  ;;  %v492_v41 = vld [vmem:[#allocation5 + $0xa8] sm:$0xff] }
  0x6e   :  { %857 = vmatprep.subr.bf16.mxu0 %v624_v43  ;;  %898 = vmatprep.subr.bf16.mxu1 %v688_v44  ;;  %v524_v42 = vld [vmem:[#allocation5 + $0x1a8] sm:$0xff]  ;;  %v647_v43 = vunpack.c.l.s8.bf16 %v495_v35  ;;  %v711_v44 = vunpack.c.l.s8.bf16 %v527_v36  ;;  %v644_v45 = vunpack.c.h.s8.bf16 %v492_v41  ;;  %v640_v51 = vunpack.c.l.s8.bf16 %v492_v41 }
  0x6f   :  { %v708_v46 = vunpack.c.h.s8.bf16 %v524_v42  ;;  %v704_v52 = vunpack.c.l.s8.bf16 %v524_v42 }
  0x71   :  { %858 = vmatpush1.bf16.msra.mxu0 %v623_v47  ;;  %899 = vmatpush1.bf16.msra.mxu1 %v687_v48  ;;  %v491_v47 = vld [vmem:[#allocation5 + $0xa0] sm:$0xff] }
  0x72   :  { %859 = vmatprep.subr.bf16.mxu0 %v620_v49  ;;  %900 = vmatprep.subr.bf16.mxu1 %v684_v50  ;;  %v523_v48 = vld [vmem:[#allocation5 + $0x1a0] sm:$0xff]  ;;  %v643_v49 = vunpack.c.h.s8.bf16 %v491_v47 }
  0x73   :  { %v707_v50 = vunpack.c.h.s8.bf16 %v523_v48 }
  0x75   :  { %860 = vmatpush1.bf16.msra.mxu0 %v619_v53  ;;  %901 = vmatpush1.bf16.msra.mxu1 %v683_v54  ;;  %v488_v53 = vld [vmem:[#allocation5 + $0x88] sm:$0xff] }
  0x76   :  { %861 = vmatprep.subr.bf16.mxu0 %v616_v55  ;;  %902 = vmatprep.subr.bf16.mxu1 %v680_v57  ;;  %v520_v54 = vld [vmem:[#allocation5 + $0x188] sm:$0xff]  ;;  %v639_v55 = vunpack.c.l.s8.bf16 %v491_v47  ;;  %v703_v57 = vunpack.c.l.s8.bf16 %v523_v48  ;;  %v636_v58 = vunpack.c.h.s8.bf16 %v488_v53  ;;  %v632_v63 = vunpack.c.l.s8.bf16 %v488_v53  ;;  %v547_v47 = vld [vmem:[#allocation5 + $0x260] sm:$0xff] }
  0x77   :  { %v700_v56 = vunpack.c.h.s8.bf16 %v520_v54  ;;  %v696_v1 = vunpack.c.l.s8.bf16 %v520_v54  ;;  %v579_v48 = vld [vmem:[#allocation5 + $0x360] sm:$0xff]  ;;  %v755_v54 = vunpack.c.h.s8.bf16 %v547_v47 }
  0x79   :  { %862 = vmatpush1.bf16.msra.mxu0 %v615_v59  ;;  %903 = vmatpush1.bf16.msra.mxu1 %v679_v60  ;;  %v487_v59 = vld [vmem:[#allocation5 + $0x80] sm:$0xff] }
  0x7a   :  { %863 = vmatprep.subr.bf16.mxu0 %v612_v61  ;;  %904 = vmatprep.subr.bf16.mxu1 %v676_v62  ;;  %v519_v60 = vld [vmem:[#allocation5 + $0x180] sm:$0xff]  ;;  %v635_v61 = vunpack.c.h.s8.bf16 %v487_v59 }
  0x7b   :  { %v699_v62 = vunpack.c.h.s8.bf16 %v519_v60 }
  0x7d   :  { %864 = vmatpush1.bf16.msra.mxu0 %v611_v2  ;;  %905 = vmatpush1.bf16.msra.mxu1 %v675_v3  ;;  %v1916_v2 = vld [vmem:[#allocation5 + $0x268] sm:$0xff] }
  0x7e   :  { %865 = vmatprep.subr.bf16.mxu0 %v608_v4  ;;  %906 = vmatprep.subr.bf16.mxu1 %v672_v5  ;;  %v1918_v3 = vld [vmem:[#allocation5 + $0x368] sm:$0xff]  ;;  %v631_v4 = vunpack.c.l.s8.bf16 %v487_v59  ;;  %v695_v5 = vunpack.c.l.s8.bf16 %v519_v60  ;;  %v756_v6 = vunpack.c.h.s8.bf16 %v1916_v2 }
  0x7f   :  { %v820_v7 = vunpack.c.h.s8.bf16 %v1918_v3  ;;  %v544_v59 = vld [vmem:[#allocation5 + $0x248] sm:$0xff] }
  0x80   :  { %v576_v60 = vld [vmem:[#allocation5 + $0x348] sm:$0xff] }
  0x81   :  { %866 = vmatpush1.bf16.msra.mxu0 %v607_v8  ;;  %907 = vmatpush1.bf16.msra.mxu1 %v671_v9  ;;  %v357_v8 = vlaneseq }
  0x82   :  { %867 = vmatprep.subr.bf16.mxu0 %v604_v10  ;;  %908 = vmatprep.subr.bf16.mxu1 %v668_v11  ;;  %v1928_v11 = vld [vmem:[%s2124_s2] sm:$0xff] }
  0x83   :  { %v1922_v9 = vshrl.u32 %v357_v8, 7  ;;  %v540_v8 = vld [vmem:[#allocation5 + $0x228] sm:$0xff] }
  0x85   :  { %868 = vmatpush1.bf16.msra.mxu0 %v603_v14  ;;  %909 = vmatpush1.bf16.msra.mxu1 %v667_v15  ;;  %v375_v10 = vsub.s32 4, %v1922_v9  ;;  %v383_v13 = vsub.s32 6, %v1922_v9  ;;  %v1949_v17 = vsub.s32 0, %v1922_v9  ;;  %v1952_v18 = vsub.s32 2, %v1922_v9 }
  0x86   :  { %869 = vmatprep.subr.bf16.mxu0 %v600_v16  ;;  %910 = vmatprep.subr.bf16.mxu1 %v664_v0 }
  0x87   :  { %v1937_v14 = vrot.slane %v1928_v11, %v375_v10  ;;  %v1940_v15 = vrot.slane %v1933_v12, %v375_v10  ;;  %v1943_v16 = vrot.slane %v1928_v11, %v383_v13  ;;  %v1946_v0 = vrot.slane %v1933_v12, %v383_v13  ;;  %v572_v10 = vld [vmem:[#allocation5 + $0x328] sm:$0xff] }
  0x88   :  { %v410_v23 = vrot.slane %v1933_v12, %v1949_v17  ;;  %v418_v24 = vrot.slane %v1933_v12, %v1952_v18 }
  0x89   :  { %870 = vmatpush1.bf16.msra.mxu0 %v599_v19  ;;  %911 = vmatpush1.bf16.msra.mxu1 %v663_v20  ;;  %v1955_v19 = vsub.s32 1, %v1922_v9  ;;  %v1958_v20 = vsub.s32 3, %v1922_v9 }
  0x8a   :  { %871 = vmatprep.subr.bf16.mxu0 %v660_v21  ;;  %912 = vmatprep.subr.bf16.mxu1 %v724_v22  ;;  %v360_v21 = vrot.slane %v1928_v11, %v1949_v17  ;;  %v368_v22 = vrot.slane %v1928_v11, %v1952_v18 }
  0x8d   :  { %872 = vmatpush2.bf16.msra.mxu0 %v659_v25  ;;  %913 = vmatpush2.bf16.msra.mxu1 %v723_v26  ;;  %v364_v25 = vrot.slane %v1928_v11, %v1955_v19  ;;  %v372_v26 = vrot.slane %v1928_v11, %v1958_v20 }
  0x8e   :  { %873 = vmatprep.subr.bf16.mxu0 %v656_v27  ;;  %914 = vmatprep.subr.bf16.mxu1 %v720_v28 }
  0x91   :  { %874 = vmatpush2.bf16.msra.mxu0 %v655_v31  ;;  %915 = vmatpush2.bf16.msra.mxu1 %v719_v32  ;;  %v414_v31 = vrot.slane %v1933_v12, %v1955_v19  ;;  %v422_v32 = vrot.slane %v1933_v12, %v1958_v20 }
  0x92   :  { %875 = vmatprep.subr.bf16.mxu0 %v652_v33  ;;  %916 = vmatprep.subr.bf16.mxu1 %v716_v34 }
  0x95   :  { %876 = vmatpush2.bf16.msra.mxu0 %v651_v37  ;;  %917 = vmatpush2.bf16.msra.mxu1 %v715_v38 }
  0x96   :  { %877 = vmatprep.subr.bf16.mxu0 %v648_v39  ;;  %918 = vmatprep.subr.bf16.mxu1 %v712_v40 }
  0x99   :  { %878 = vmatpush2.bf16.msra.mxu0 %v647_v43  ;;  %919 = vmatpush2.bf16.msra.mxu1 %v711_v44 }
  0x9a   :  { %879 = vmatprep.subr.bf16.mxu0 %v644_v45  ;;  %920 = vmatprep.subr.bf16.mxu1 %v708_v46 }
  0x9d   :  { %880 = vmatpush2.bf16.msra.mxu0 %v643_v49  ;;  %921 = vmatpush2.bf16.msra.mxu1 %v707_v50 }
  0x9e   :  { %881 = vmatprep.subr.bf16.mxu0 %v640_v51  ;;  %922 = vmatprep.subr.bf16.mxu1 %v704_v52 }
  0xa1   :  { %882 = vmatpush2.bf16.msra.mxu0 %v639_v55  ;;  %923 = vmatpush2.bf16.msra.mxu1 %v703_v57  ;;  %v819_v55 = vunpack.c.h.s8.bf16 %v579_v48 }
  0xa2   :  { %883 = vmatprep.subr.bf16.mxu0 %v636_v58  ;;  %924 = vmatprep.subr.bf16.mxu1 %v700_v56  ;;  %v752_v58 = vunpack.c.l.s8.bf16 %v1916_v2  ;;  %v816_v56 = vunpack.c.l.s8.bf16 %v1918_v3  ;;  %v543_v2 = vld [vmem:[#allocation5 + $0x240] sm:$0xff] }
  0xa3   :  { %v575_v3 = vld [vmem:[#allocation5 + $0x340] sm:$0xff]  ;;  %v743_v13 = vunpack.c.l.s8.bf16 %v543_v2 }
  0xa5   :  { %884 = vmatpush2.bf16.msra.mxu0 %v635_v61  ;;  %925 = vmatpush2.bf16.msra.mxu1 %v699_v62  ;;  %v751_v61 = vunpack.c.l.s8.bf16 %v547_v47  ;;  %v815_v62 = vunpack.c.l.s8.bf16 %v579_v48 }
  0xa6   :  { %885 = vmatprep.subr.bf16.mxu0 %v632_v63  ;;  %926 = vmatprep.subr.bf16.mxu1 %v696_v1  ;;  %v748_v63 = vunpack.c.h.s8.bf16 %v544_v59  ;;  %v812_v1 = vunpack.c.h.s8.bf16 %v576_v60 }
  0xa9   :  { %886 = vmatpush2.bf16.msra.mxu0 %v631_v4  ;;  %927 = vmatpush2.bf16.msra.mxu1 %v695_v5  ;;  %v747_v4 = vunpack.c.h.s8.bf16 %v543_v2  ;;  %v811_v5 = vunpack.c.h.s8.bf16 %v575_v3 }
  0xaa   :  { %937 = vmatprep.subr.bf16.mxu0 %v756_v6  ;;  %978 = vmatprep.subr.bf16.mxu1 %v820_v7  ;;  %v744_v6 = vunpack.c.l.s8.bf16 %v544_v59  ;;  %v808_v7 = vunpack.c.l.s8.bf16 %v576_v60 }
 0x10c   :  { %v225_v27 = vpop.f32.mrf.mxu0  ;;  %v266_v28 = vpop.f32.mrf.mxu1 }
 0x10d   :  { %v397_v29 = vmul.f32 %v360_v21, %v225_v27  ;;  %v399_v30 = vmul.f32 %v368_v22, %v266_v28  ;;  %v807_v21 = vunpack.c.l.s8.bf16 %v575_v3  ;;  %v740_v22 = vunpack.c.h.s8.bf16 %v540_v8 }
 0x10e   :  { %v227_v33 = vpop.f32.mrf.mxu0  ;;  %v268_v34 = vpop.f32.mrf.mxu1  ;;  %v736_v28 = vunpack.c.l.s8.bf16 %v540_v8 }
 0x10f   :  { %v447_v35 = vadd.f32 %v410_v23, %v397_v29  ;;  %v449_v36 = vadd.f32 %v418_v24, %v399_v30  ;;  %v398_v37 = vmul.f32 %v364_v25, %v227_v33  ;;  %v400_v38 = vmul.f32 %v372_v26, %v268_v34  ;;  %v539_v24 = vld [vmem:[#allocation5 + $0x220] sm:$0xff]  ;;  %v536_v30 = vld [vmem:[#allocation5 + $0x208] sm:$0xff] }
 0x110   :  { %v229_v39 = vpop.f32.mrf.mxu0  ;;  %v270_v40 = vpop.f32.mrf.mxu1  ;;  %v804_v23 = vunpack.c.h.s8.bf16 %v572_v10  ;;  %v571_v25 = vld [vmem:[#allocation5 + $0x320] sm:$0xff]  ;;  %v739_v26 = vunpack.c.h.s8.bf16 %v539_v24  ;;  %v800_v29 = vunpack.c.l.s8.bf16 %v572_v10  ;;  %v387_v33 = vsub.s32 7, %v1922_v9 }
 0x111   :  { %v457_v41 = vmax.f32 %v449_v36, 0.0  ;;  %v448_v42 = vadd.f32 %v414_v31, %v398_v37  ;;  %v450_v43 = vadd.f32 %v422_v32, %v400_v38  ;;  %v455_v44 = vmax.f32 %v447_v35, 0.0  ;;  %v568_v31 = vld [vmem:[#allocation5 + $0x308] sm:$0xff]  ;;  %v535_v36 = vld [vmem:[#allocation5 + $0x200] sm:$0xff] }
 0x112   :  { %v230_v45 = vpop.f32.mrf.mxu0  ;;  %v271_v46 = vpop.f32.mrf.mxu1  ;;  %v803_v27 = vunpack.c.h.s8.bf16 %v571_v25  ;;  %v379_v32 = vsub.s32 5, %v1922_v9  ;;  %v735_v34 = vunpack.c.l.s8.bf16 %v539_v24  ;;  %v799_v35 = vunpack.c.l.s8.bf16 %v571_v25  ;;  %v567_v39 = vld [vmem:[#allocation5 + $0x300] sm:$0xff]  ;;  %v560_v24 = vld [vmem:[#allocation5 + $0x2c8] sm:$0xff] }
 0x113   :  { %v456_v49 = vmax.f32 %v448_v42, 0.0  ;;  %v458_v50 = vmax.f32 %v450_v43, 0.0  ;;  %v1976_v51 = vpack.c.bf16 %v457_v41, %v457_v41  ;;  %v1982_v57 = vpack.c.bf16 %v455_v44, %v455_v44  ;;  %v592_v25 = vld [vmem:[#allocation5 + $0x3c8] sm:$0xff] }
 0x114   :  { %v732_v37 = vunpack.c.h.s8.bf16 %v536_v30  ;;  %v796_v38 = vunpack.c.h.s8.bf16 %v568_v31  ;;  %v380_v40 = vrot.slane %v1928_v11, %v379_v32  ;;  %v388_v41 = vrot.slane %v1928_v11, %v387_v33 }
 0x115   :  { %v1978_v52 = vpack.c.bf16 %v456_v49, %v456_v49  ;;  %v1980_v53 = vpack.c.bf16 %v458_v50, %v458_v50  ;;  %v731_v42 = vunpack.c.h.s8.bf16 %v535_v36  ;;  %v430_v44 = vrot.slane %v1933_v12, %v379_v32 }
 0x116   :  { %v795_v9 = vunpack.c.h.s8.bf16 %v567_v39  ;;  %v438_v48 = vrot.slane %v1933_v12, %v387_v33  ;;  %v728_v49 = vunpack.c.l.s8.bf16 %v536_v30  ;;  %v792_v50 = vunpack.c.l.s8.bf16 %v568_v31  ;;  %v559_v30 = vld [vmem:[#allocation5 + $0x2c0] sm:$0xff] }
 0x117   :  { %887 = vmatprep.mubr.bf16.mxu0 %v1978_v52  ;;  %928 = vmatprep.mubr.bf16.mxu1 %v1980_v53  ;;  %v727_v12 = vunpack.c.l.s8.bf16 %v535_v36  ;;  %v591_v31 = vld [vmem:[#allocation5 + $0x3c0] sm:$0xff]  ;;  %v779_v32 = vunpack.c.h.s8.bf16 %v559_v30  ;;  %v556_v36 = vld [vmem:[#allocation5 + $0x2a8] sm:$0xff] }
 0x118   :  { %888 = vmatmul.mubr.bf16.vlgmr.msra.gmra.mxu0 %v1982_v57  ;;  %929 = vmatmul.mubr.bf16.vlgmr.msra.gmra.mxu1 %v1976_v51  ;;  %v843_v33 = vunpack.c.h.s8.bf16 %v591_v31 }
 0x119   :  { %938 = vmatpush1.bf16.msra.mxu0 %v755_v54  ;;  %979 = vmatpush1.bf16.msra.mxu1 %v819_v55  ;;  %v564_v55 = vld [vmem:[#allocation5 + $0x2e8] sm:$0xff] }
 0x11a   :  { %939 = vmatprep.subr.bf16.mxu0 %v752_v58  ;;  %980 = vmatprep.subr.bf16.mxu1 %v816_v56  ;;  %v596_v58 = vld [vmem:[#allocation5 + $0x3e8] sm:$0xff]  ;;  %v788_v2 = vunpack.c.h.s8.bf16 %v564_v55 }
 0x11b   :  { %v852_v3 = vunpack.c.h.s8.bf16 %v596_v58 }
 0x11d   :  { %940 = vmatpush1.bf16.msra.mxu0 %v751_v61  ;;  %981 = vmatpush1.bf16.msra.mxu1 %v815_v62  ;;  %v791_v62 = vunpack.c.l.s8.bf16 %v567_v39  ;;  %v839_v39 = vunpack.c.l.s8.bf16 %v591_v31 }
 0x11e   :  { %941 = vmatprep.subr.bf16.mxu0 %v748_v63  ;;  %982 = vmatprep.subr.bf16.mxu1 %v812_v1 }
 0x121   :  { %942 = vmatpush1.bf16.msra.mxu0 %v747_v4  ;;  %983 = vmatpush1.bf16.msra.mxu1 %v811_v5  ;;  %v563_v4 = vld [vmem:[#allocation5 + $0x2e0] sm:$0xff] }
 0x122   :  { %943 = vmatprep.subr.bf16.mxu0 %v744_v6  ;;  %984 = vmatprep.subr.bf16.mxu1 %v808_v7  ;;  %v787_v8 = vunpack.c.h.s8.bf16 %v563_v4 }
 0x125   :  { %944 = vmatpush1.bf16.msra.mxu0 %v743_v13  ;;  %985 = vmatpush1.bf16.msra.mxu1 %v807_v21 }
 0x126   :  { %945 = vmatprep.subr.bf16.mxu0 %v740_v22  ;;  %986 = vmatprep.subr.bf16.mxu1 %v804_v23  ;;  %v784_v22 = vunpack.c.l.s8.bf16 %v564_v55  ;;  %v848_v23 = vunpack.c.l.s8.bf16 %v596_v58  ;;  %v551_v55 = vld [vmem:[#allocation5 + $0x280] sm:$0xff] }
 0x127   :  { %v583_v58 = vld [vmem:[#allocation5 + $0x380] sm:$0xff] }
 0x129   :  { %946 = vmatpush1.bf16.msra.mxu0 %v739_v26  ;;  %987 = vmatpush1.bf16.msra.mxu1 %v803_v27  ;;  %v783_v26 = vunpack.c.l.s8.bf16 %v563_v4 }
 0x12a   :  { %947 = vmatprep.subr.bf16.mxu0 %v736_v28  ;;  %988 = vmatprep.subr.bf16.mxu1 %v800_v29  ;;  %v780_v28 = vunpack.c.h.s8.bf16 %v560_v24  ;;  %v844_v29 = vunpack.c.h.s8.bf16 %v592_v25 }
 0x12c   :  { %v307_v43 = vpop.f32.mrf.mxu0  ;;  %v348_v45 = vpop.f32.mrf.mxu1 }
 0x12d   :  { %948 = vmatpush1.bf16.msra.mxu0 %v735_v34  ;;  %989 = vmatpush1.bf16.msra.mxu1 %v799_v35  ;;  %v401_v46 = vmul.f32 %v1937_v14, %v307_v43  ;;  %v403_v47 = vmul.f32 %v1943_v16, %v348_v45  ;;  %v776_v34 = vunpack.c.l.s8.bf16 %v560_v24  ;;  %v840_v35 = vunpack.c.l.s8.bf16 %v592_v25  ;;  %v587_v43 = vld [vmem:[#allocation5 + $0x3a0] sm:$0xff] }
 0x12e   :  { %949 = vmatprep.subr.bf16.mxu0 %v732_v37  ;;  %990 = vmatprep.subr.bf16.mxu1 %v796_v38  ;;  %v309_v54 = vpop.f32.mrf.mxu0  ;;  %v350_v11 = vpop.f32.mrf.mxu1  ;;  %v588_v37 = vld [vmem:[#allocation5 + $0x3a8] sm:$0xff]  ;;  %v775_v38 = vunpack.c.l.s8.bf16 %v559_v30  ;;  %v835_v45 = vunpack.c.h.s8.bf16 %v587_v43 }
 0x12f   :  { %v1999_v56 = vadd.f32 %v1940_v15, %v401_v46  ;;  %v402_v59 = vmul.f32 %v380_v40, %v309_v54  ;;  %v2002_v60 = vadd.f32 %v1946_v0, %v403_v47  ;;  %v404_v14 = vmul.f32 %v388_v41, %v350_v11  ;;  %v595_v15 = vld [vmem:[#allocation5 + $0x3e0] sm:$0xff]  ;;  %v552_v47 = vld [vmem:[#allocation5 + $0x288] sm:$0xff] }
 0x130   :  { %v311_v61 = vpop.f32.mrf.mxu0  ;;  %v352_v16 = vpop.f32.mrf.mxu1  ;;  %v851_v10 = vunpack.c.h.s8.bf16 %v595_v15  ;;  %v847_v27 = vunpack.c.l.s8.bf16 %v595_v15  ;;  %v772_v40 = vunpack.c.h.s8.bf16 %v556_v36  ;;  %v836_v41 = vunpack.c.h.s8.bf16 %v588_v37 }
 0x131   :  { %950 = vmatpush1.bf16.msra.mxu0 %v731_v42  ;;  %991 = vmatpush1.bf16.msra.mxu1 %v795_v9  ;;  %v452_v63 = vadd.f32 %v430_v44, %v402_v59  ;;  %v454_v1 = vadd.f32 %v438_v48, %v404_v14  ;;  %v555_v42 = vld [vmem:[#allocation5 + $0x2a0] sm:$0xff]  ;;  %v768_v9 = vunpack.c.l.s8.bf16 %v556_v36  ;;  %v832_v46 = vunpack.c.l.s8.bf16 %v588_v37  ;;  %v584_v48 = vld [vmem:[#allocation5 + $0x388] sm:$0xff]  ;;  %v477_v37 = vld [vmem:[#allocation5 + $0x30] sm:$0xff] }
 0x132   :  { %951 = vmatprep.subr.bf16.mxu0 %v728_v49  ;;  %992 = vmatprep.subr.bf16.mxu1 %v792_v50  ;;  %v312_v5 = vpop.f32.mrf.mxu0  ;;  %v353_v6 = vpop.f32.mrf.mxu1  ;;  %v771_v44 = vunpack.c.h.s8.bf16 %v555_v42  ;;  %v767_v49 = vunpack.c.l.s8.bf16 %v555_v42  ;;  %v831_v50 = vunpack.c.l.s8.bf16 %v587_v43  ;;  %v764_v54 = vunpack.c.h.s8.bf16 %v552_v47 }
 0x133   :  { %v460_v7 = vmax.f32 %v452_v63, 0.0  ;;  %v462_v0 = vmax.f32 %v454_v1, 0.0  ;;  %v828_v11 = vunpack.c.h.s8.bf16 %v584_v48  ;;  %v763_v59 = vunpack.c.h.s8.bf16 %v551_v55  ;;  %v485_v5 = vld [vmem:[#allocation5 + $0x70] sm:$0xff] }
 0x134   :  { %v827_v14 = vunpack.c.h.s8.bf16 %v583_v58  ;;  %v760_v61 = vunpack.c.l.s8.bf16 %v552_v47  ;;  %v824_v16 = vunpack.c.l.s8.bf16 %v584_v48  ;;  %v461_v63 = vmax.f32 %v2002_v60, 0.0  ;;  %v517_v6 = vld [vmem:[#allocation5 + $0x170] sm:$0xff] }
 0x135   :  { %952 = vmatpush1.bf16.msra.mxu0 %v727_v12  ;;  %993 = vmatpush1.bf16.msra.mxu1 %v791_v62  ;;  %v2004_v13 = vpack.c.bf16 %v460_v7, %v460_v7  ;;  %v2006_v21 = vpack.c.bf16 %v462_v0, %v462_v0  ;;  %v486_v12 = vld [vmem:[#allocation5 + $0x78] sm:$0xff]  ;;  %v759_v1 = vunpack.c.l.s8.bf16 %v551_v55  ;;  %v629_v0 = vunpack.c.h.s8.bf16 %v485_v5  ;;  %v473_v48 = vld [vmem:[#allocation5 + $0x10] sm:$0xff] }
 0x136   :  { %953 = vmatprep.subr.bf16.mxu0 %v788_v2  ;;  %994 = vmatprep.subr.bf16.mxu1 %v852_v3  ;;  %v518_v62 = vld [vmem:[#allocation5 + $0x178] sm:$0xff]  ;;  %v823_v2 = vunpack.c.l.s8.bf16 %v583_v58  ;;  %v459_v3 = vmax.f32 %v1999_v56, 0.0  ;;  %v630_v4 = vunpack.c.h.s8.bf16 %v486_v12  ;;  %v2012_v7 = vpack.c.bf16 %v461_v63, %v461_v63 }
 0x137   :  { %969 = vmatprep.mubr.bf16.mxu0 %v2004_v13  ;;  %1010 = vmatprep.mubr.bf16.mxu1 %v2006_v21  ;;  %v694_v15 = vunpack.c.h.s8.bf16 %v518_v62  ;;  %v693_v60 = vunpack.c.h.s8.bf16 %v517_v6  ;;  %v514_v56 = vld [vmem:[#allocation5 + $0x158] sm:$0xff]  ;;  %v625_v24 = vunpack.c.l.s8.bf16 %v485_v5  ;;  %v689_v25 = vunpack.c.l.s8.bf16 %v517_v6 }
 0x138   :  { %v498_v5 = vld [vmem:[#allocation5 + $0xd8] sm:$0xff] }
 0x139   :  { %954 = vmatpush2.bf16.msra.mxu0 %v787_v8  ;;  %995 = vmatpush2.bf16.msra.mxu1 %v851_v10  ;;  %v2014_v8 = vpack.c.bf16 %v459_v3, %v459_v3  ;;  %v626_v10 = vunpack.c.l.s8.bf16 %v486_v12  ;;  %v530_v6 = vld [vmem:[#allocation5 + $0x1d8] sm:$0xff] }
 0x13a   :  { %955 = vmatprep.subr.bf16.mxu0 %v784_v22  ;;  %996 = vmatprep.subr.bf16.mxu1 %v848_v23  ;;  %v690_v22 = vunpack.c.l.s8.bf16 %v518_v62  ;;  %v482_v23 = vld [vmem:[#allocation5 + $0x58] sm:$0xff]  ;;  %v501_v62 = vld [vmem:[#allocation5 + $0xf0] sm:$0xff] }
 0x13d   :  { %956 = vmatpush2.bf16.msra.mxu0 %v783_v26  ;;  %997 = vmatpush2.bf16.msra.mxu1 %v847_v27  ;;  %v622_v26 = vunpack.c.h.s8.bf16 %v482_v23  ;;  %v481_v27 = vld [vmem:[#allocation5 + $0x50] sm:$0xff] }
 0x13e   :  { %957 = vmatprep.subr.bf16.mxu0 %v780_v28  ;;  %998 = vmatprep.subr.bf16.mxu1 %v844_v29  ;;  %v686_v28 = vunpack.c.h.s8.bf16 %v514_v56  ;;  %v513_v29 = vld [vmem:[#allocation5 + $0x150] sm:$0xff]  ;;  %v621_v30 = vunpack.c.h.s8.bf16 %v481_v27 }
 0x13f   :  { %v685_v31 = vunpack.c.h.s8.bf16 %v513_v29 }
 0x141   :  { %958 = vmatpush2.bf16.msra.mxu0 %v779_v32  ;;  %999 = vmatpush2.bf16.msra.mxu1 %v843_v33  ;;  %v618_v32 = vunpack.c.l.s8.bf16 %v482_v23  ;;  %v682_v33 = vunpack.c.l.s8.bf16 %v514_v56  ;;  %v718_v23 = vunpack.c.h.s8.bf16 %v530_v6  ;;  %v529_v56 = vld [vmem:[#allocation5 + $0x1d0] sm:$0xff] }
 0x142   :  { %959 = vmatprep.subr.bf16.mxu0 %v776_v34  ;;  %1000 = vmatprep.subr.bf16.mxu1 %v840_v35  ;;  %v510_v34 = vld [vmem:[#allocation5 + $0x138] sm:$0xff]  ;;  %v617_v35 = vunpack.c.l.s8.bf16 %v481_v27  ;;  %v714_v27 = vunpack.c.l.s8.bf16 %v530_v6  ;;  %v577_v6 = vld [vmem:[#allocation5 + $0x350] sm:$0xff] }
 0x143   :  { %v674_v43 = vunpack.c.l.s8.bf16 %v510_v34 }
 0x145   :  { %960 = vmatpush2.bf16.msra.mxu0 %v775_v38  ;;  %1001 = vmatpush2.bf16.msra.mxu1 %v839_v39  ;;  %v678_v38 = vunpack.c.h.s8.bf16 %v510_v34  ;;  %v509_v39 = vld [vmem:[#allocation5 + $0x130] sm:$0xff] }
 0x146   :  { %961 = vmatprep.subr.bf16.mxu0 %v772_v40  ;;  %1002 = vmatprep.subr.bf16.mxu1 %v836_v41  ;;  %v613_v40 = vunpack.c.h.s8.bf16 %v477_v37  ;;  %v677_v41 = vunpack.c.h.s8.bf16 %v509_v39  ;;  %v525_v34 = vld [vmem:[#allocation5 + $0x1b0] sm:$0xff] }
 0x149   :  { %962 = vmatpush2.bf16.msra.mxu0 %v771_v44  ;;  %1003 = vmatpush2.bf16.msra.mxu1 %v835_v45  ;;  %v474_v44 = vld [vmem:[#allocation5 + $0x18] sm:$0xff] }
 0x14a   :  { %963 = vmatprep.subr.bf16.mxu0 %v768_v9  ;;  %1004 = vmatprep.subr.bf16.mxu1 %v832_v46  ;;  %v506_v45 = vld [vmem:[#allocation5 + $0x118] sm:$0xff]  ;;  %v609_v9 = vunpack.c.l.s8.bf16 %v477_v37  ;;  %v673_v46 = vunpack.c.l.s8.bf16 %v509_v39  ;;  %v606_v47 = vunpack.c.h.s8.bf16 %v474_v44  ;;  %v602_v55 = vunpack.c.l.s8.bf16 %v474_v44 }
 0x14b   :  { %v666_v58 = vunpack.c.l.s8.bf16 %v506_v45  ;;  %v522_v39 = vld [vmem:[#allocation5 + $0x198] sm:$0xff] }
 0x14c   :  { %v702_v44 = vunpack.c.h.s8.bf16 %v522_v39 }
 0x14d   :  { %964 = vmatpush2.bf16.msra.mxu0 %v767_v49  ;;  %1005 = vmatpush2.bf16.msra.mxu1 %v831_v50  ;;  %v670_v49 = vunpack.c.h.s8.bf16 %v506_v45  ;;  %v505_v50 = vld [vmem:[#allocation5 + $0x110] sm:$0xff] }
 0x14e   :  { %965 = vmatprep.subr.bf16.mxu0 %v764_v54  ;;  %1006 = vmatprep.subr.bf16.mxu1 %v828_v11  ;;  %v605_v54 = vunpack.c.h.s8.bf16 %v473_v48  ;;  %v669_v11 = vunpack.c.h.s8.bf16 %v505_v50  ;;  %v521_v45 = vld [vmem:[#allocation5 + $0x190] sm:$0xff] }
 0x151   :  { %966 = vmatpush2.bf16.msra.mxu0 %v763_v59  ;;  %1007 = vmatpush2.bf16.msra.mxu1 %v827_v14  ;;  %v502_v59 = vld [vmem:[#allocation5 + $0xf8] sm:$0xff] }
 0x152   :  { %967 = vmatprep.subr.bf16.mxu0 %v760_v61  ;;  %1008 = vmatprep.subr.bf16.mxu1 %v824_v16  ;;  %v534_v14 = vld [vmem:[#allocation5 + $0x1f8] sm:$0xff]  ;;  %v601_v61 = vunpack.c.l.s8.bf16 %v473_v48  ;;  %v665_v16 = vunpack.c.l.s8.bf16 %v505_v50  ;;  %v662_v12 = vunpack.c.h.s8.bf16 %v502_v59  ;;  %v698_v48 = vunpack.c.l.s8.bf16 %v522_v39 }
 0x153   :  { %v726_v63 = vunpack.c.h.s8.bf16 %v534_v14  ;;  %v582_v50 = vld [vmem:[#allocation5 + $0x378] sm:$0xff] }
 0x155   :  { %968 = vmatpush2.bf16.msra.mxu0 %v759_v1  ;;  %1009 = vmatpush2.bf16.msra.mxu1 %v823_v2  ;;  %v533_v1 = vld [vmem:[#allocation5 + $0x1f0] sm:$0xff]  ;;  %v661_v2 = vunpack.c.h.s8.bf16 %v501_v62 }
 0x156   :  { %1019 = vmatprep.subr.bf16.mxu0 %v630_v4  ;;  %1060 = vmatprep.subr.bf16.mxu1 %v694_v15  ;;  %v725_v3 = vunpack.c.h.s8.bf16 %v533_v1  ;;  %v658_v4 = vunpack.c.l.s8.bf16 %v502_v59  ;;  %v722_v15 = vunpack.c.l.s8.bf16 %v534_v14  ;;  %v822_v59 = vunpack.c.h.s8.bf16 %v582_v50  ;;  %v581_v14 = vld [vmem:[#allocation5 + $0x370] sm:$0xff] }
 0x158   :  { %970 = vmatmul.mubr.bf16.vlgmr.msra.gmra.mxu0 %v2014_v8  ;;  %1011 = vmatmul.mubr.bf16.vlgmr.msra.gmra.mxu1 %v2012_v7 }
 0x159   :  { %1020 = vmatpush1.bf16.msra.mxu0 %v629_v0  ;;  %1051 = vmatprep.mubr.bf16.mxu0 %v1978_v52  ;;  %v478_v52 = vld [vmem:[#allocation5 + $0x38] sm:$0xff]  ;;  %v657_v0 = vunpack.c.l.s8.bf16 %v501_v62 }
 0x15a   :  { %1061 = vmatpush1.bf16.msra.mxu1 %v693_v60  ;;  %1092 = vmatprep.mubr.bf16.mxu1 %v1980_v53  ;;  %v681_v53 = vunpack.c.l.s8.bf16 %v513_v29  ;;  %v614_v36 = vunpack.c.h.s8.bf16 %v478_v52  ;;  %v610_v42 = vunpack.c.l.s8.bf16 %v478_v52  ;;  %v721_v60 = vunpack.c.l.s8.bf16 %v533_v1  ;;  %v526_v29 = vld [vmem:[#allocation5 + $0x1b8] sm:$0xff] }
 0x15b   :  { %1021 = vmatprep.subr.bf16.mxu0 %v626_v10  ;;  %1062 = vmatprep.subr.bf16.mxu1 %v690_v22  ;;  %v654_v10 = vunpack.c.h.s8.bf16 %v498_v5  ;;  %v497_v22 = vld [vmem:[#allocation5 + $0xd0] sm:$0xff]  ;;  %v710_v52 = vunpack.c.h.s8.bf16 %v526_v29  ;;  %v706_v37 = vunpack.c.l.s8.bf16 %v526_v29  ;;  %v546_v62 = vld [vmem:[#allocation5 + $0x258] sm:$0xff] }
 0x15c   :  { %v578_v1 = vld [vmem:[#allocation5 + $0x358] sm:$0xff] }
 0x15d   :  { %1022 = vmatpush1.bf16.msra.mxu0 %v625_v24  ;;  %v653_v24 = vunpack.c.h.s8.bf16 %v497_v22 }
 0x15e   :  { %1063 = vmatpush1.bf16.msra.mxu1 %v689_v25  ;;  %1023 = vmatprep.subr.bf16.mxu0 %v622_v26  ;;  %v717_v25 = vunpack.c.h.s8.bf16 %v529_v56  ;;  %v650_v26 = vunpack.c.l.s8.bf16 %v498_v5  ;;  %v814_v5 = vunpack.c.h.s8.bf16 %v578_v1 }
 0x15f   :  { %1064 = vmatprep.subr.bf16.mxu1 %v686_v28  ;;  %v494_v28 = vld [vmem:[#allocation5 + $0xb8] sm:$0xff] }
 0x161   :  { %1024 = vmatpush1.bf16.msra.mxu0 %v621_v30  ;;  %v649_v30 = vunpack.c.l.s8.bf16 %v497_v22 }
 0x162   :  { %1065 = vmatpush1.bf16.msra.mxu1 %v685_v31  ;;  %1025 = vmatprep.subr.bf16.mxu0 %v618_v32  ;;  %v713_v31 = vunpack.c.l.s8.bf16 %v529_v56  ;;  %v646_v32 = vunpack.c.h.s8.bf16 %v494_v28  ;;  %v541_v56 = vld [vmem:[#allocation5 + $0x230] sm:$0xff] }
 0x163   :  { %1066 = vmatprep.subr.bf16.mxu1 %v682_v33  ;;  %v493_v33 = vld [vmem:[#allocation5 + $0xb0] sm:$0xff] }
 0x165   :  { %1026 = vmatpush1.bf16.msra.mxu0 %v617_v35  ;;  %v645_v35 = vunpack.c.h.s8.bf16 %v493_v33 }
 0x166   :  { %1067 = vmatpush1.bf16.msra.mxu1 %v681_v53  ;;  %1027 = vmatprep.subr.bf16.mxu0 %v614_v36  ;;  %v709_v53 = vunpack.c.h.s8.bf16 %v525_v34  ;;  %v642_v36 = vunpack.c.l.s8.bf16 %v494_v28 }
 0x167   :  { %1068 = vmatprep.subr.bf16.mxu1 %v678_v38  ;;  %v490_v38 = vld [vmem:[#allocation5 + $0x98] sm:$0xff] }
 0x169   :  { %1028 = vmatpush1.bf16.msra.mxu0 %v613_v40  ;;  %v641_v40 = vunpack.c.l.s8.bf16 %v493_v33 }
 0x16a   :  { %1069 = vmatpush1.bf16.msra.mxu1 %v677_v41  ;;  %1029 = vmatprep.subr.bf16.mxu0 %v610_v42  ;;  %v705_v41 = vunpack.c.l.s8.bf16 %v525_v34  ;;  %v638_v42 = vunpack.c.h.s8.bf16 %v490_v38  ;;  %v537_v34 = vld [vmem:[#allocation5 + $0x210] sm:$0xff] }
 0x16b   :  { %1070 = vmatprep.subr.bf16.mxu1 %v674_v43  ;;  %v489_v43 = vld [vmem:[#allocation5 + $0x90] sm:$0xff] }
 0x16d   :  { %1030 = vmatpush1.bf16.msra.mxu0 %v609_v9  ;;  %v637_v9 = vunpack.c.h.s8.bf16 %v489_v43 }
 0x16e   :  { %1071 = vmatpush1.bf16.msra.mxu1 %v673_v46  ;;  %1031 = vmatprep.subr.bf16.mxu0 %v606_v47  ;;  %v701_v46 = vunpack.c.h.s8.bf16 %v521_v45  ;;  %v634_v47 = vunpack.c.l.s8.bf16 %v490_v38 }
 0x16f   :  { %1072 = vmatprep.subr.bf16.mxu1 %v670_v49  ;;  %v550_v49 = vld [vmem:[#allocation5 + $0x278] sm:$0xff] }
 0x171   :  { %1032 = vmatpush1.bf16.msra.mxu0 %v605_v54  ;;  %v633_v54 = vunpack.c.l.s8.bf16 %v489_v43 }
 0x172   :  { %1073 = vmatpush1.bf16.msra.mxu1 %v669_v11  ;;  %1033 = vmatprep.subr.bf16.mxu0 %v602_v55  ;;  %v697_v11 = vunpack.c.l.s8.bf16 %v521_v45  ;;  %v758_v55 = vunpack.c.h.s8.bf16 %v550_v49  ;;  %v565_v45 = vld [vmem:[#allocation5 + $0x2f0] sm:$0xff] }
 0x173   :  { %1074 = vmatprep.subr.bf16.mxu1 %v666_v58  ;;  %v549_v58 = vld [vmem:[#allocation5 + $0x270] sm:$0xff] }
 0x175   :  { %1034 = vmatpush1.bf16.msra.mxu0 %v601_v61  ;;  %v757_v61 = vunpack.c.h.s8.bf16 %v549_v58 }
 0x176   :  { %1075 = vmatpush1.bf16.msra.mxu1 %v665_v16  ;;  %1035 = vmatprep.subr.bf16.mxu0 %v662_v12  ;;  %v821_v16 = vunpack.c.h.s8.bf16 %v581_v14  ;;  %v754_v12 = vunpack.c.l.s8.bf16 %v550_v49 }
 0x177   :  { %1076 = vmatprep.subr.bf16.mxu1 %v726_v63  ;;  %v818_v63 = vunpack.c.l.s8.bf16 %v582_v50 }
 0x179   :  { %1036 = vmatpush2.bf16.msra.mxu0 %v661_v2  ;;  %v753_v2 = vunpack.c.l.s8.bf16 %v549_v58 }
 0x17a   :  { %1077 = vmatpush2.bf16.msra.mxu1 %v725_v3  ;;  %1037 = vmatprep.subr.bf16.mxu0 %v658_v4  ;;  %v817_v3 = vunpack.c.l.s8.bf16 %v581_v14  ;;  %v750_v4 = vunpack.c.h.s8.bf16 %v546_v62  ;;  %v561_v14 = vld [vmem:[#allocation5 + $0x2d0] sm:$0xff] }
 0x17b   :  { %1078 = vmatprep.subr.bf16.mxu1 %v722_v15  ;;  %v545_v15 = vld [vmem:[#allocation5 + $0x250] sm:$0xff] }
 0x17c   :  { %v745_v22 = vunpack.c.l.s8.bf16 %v545_v15 }
 0x17d   :  { %1038 = vmatpush2.bf16.msra.mxu0 %v657_v0  ;;  %v813_v0 = vunpack.c.h.s8.bf16 %v577_v6 }
 0x17e   :  { %1079 = vmatpush2.bf16.msra.mxu1 %v721_v60  ;;  %1039 = vmatprep.subr.bf16.mxu0 %v654_v10  ;;  %v810_v60 = vunpack.c.l.s8.bf16 %v578_v1  ;;  %v542_v10 = vld [vmem:[#allocation5 + $0x238] sm:$0xff] }
 0x17f   :  { %1080 = vmatprep.subr.bf16.mxu1 %v718_v23  ;;  %v809_v23 = vunpack.c.l.s8.bf16 %v577_v6  ;;  %v738_v28 = vunpack.c.l.s8.bf16 %v542_v10  ;;  %v557_v6 = vld [vmem:[#allocation5 + $0x2b0] sm:$0xff] }
 0x181   :  { %1040 = vmatpush2.bf16.msra.mxu0 %v653_v24 }
 0x182   :  { %1081 = vmatpush2.bf16.msra.mxu1 %v717_v25  ;;  %1041 = vmatprep.subr.bf16.mxu0 %v650_v26  ;;  %v573_v25 = vld [vmem:[#allocation5 + $0x330] sm:$0xff]  ;;  %v741_v26 = vunpack.c.h.s8.bf16 %v541_v56 }
 0x183   :  { %1082 = vmatprep.subr.bf16.mxu1 %v714_v27  ;;  %v805_v27 = vunpack.c.h.s8.bf16 %v573_v25  ;;  %v801_v33 = vunpack.c.l.s8.bf16 %v573_v25  ;;  %v553_v25 = vld [vmem:[#allocation5 + $0x290] sm:$0xff] }
 0x185   :  { %1042 = vmatpush2.bf16.msra.mxu0 %v649_v30  ;;  %v538_v30 = vld [vmem:[#allocation5 + $0x218] sm:$0xff] }
 0x186   :  { %1083 = vmatpush2.bf16.msra.mxu1 %v713_v31  ;;  %1043 = vmatprep.subr.bf16.mxu0 %v646_v32  ;;  %v570_v31 = vld [vmem:[#allocation5 + $0x318] sm:$0xff]  ;;  %v737_v32 = vunpack.c.l.s8.bf16 %v541_v56  ;;  %v730_v38 = vunpack.c.l.s8.bf16 %v538_v30 }
 0x187   :  { %1084 = vmatprep.subr.bf16.mxu1 %v710_v52  ;;  %v734_v52 = vunpack.c.h.s8.bf16 %v538_v30  ;;  %v794_v39 = vunpack.c.l.s8.bf16 %v570_v31 }
 0x189   :  { %1044 = vmatpush2.bf16.msra.mxu0 %v645_v35  ;;  %v798_v35 = vunpack.c.h.s8.bf16 %v570_v31 }
 0x18a   :  { %1085 = vmatpush2.bf16.msra.mxu1 %v709_v53  ;;  %1045 = vmatprep.subr.bf16.mxu0 %v642_v36  ;;  %v569_v53 = vld [vmem:[#allocation5 + $0x310] sm:$0xff]  ;;  %v733_v36 = vunpack.c.h.s8.bf16 %v537_v34 }
 0x18b   :  { %1086 = vmatprep.subr.bf16.mxu1 %v706_v37  ;;  %v797_v37 = vunpack.c.h.s8.bf16 %v569_v53  ;;  %v793_v43 = vunpack.c.l.s8.bf16 %v569_v53 }
 0x18d   :  { %1046 = vmatpush2.bf16.msra.mxu0 %v641_v40  ;;  %v566_v40 = vld [vmem:[#allocation5 + $0x2f8] sm:$0xff] }
 0x18e   :  { %1087 = vmatpush2.bf16.msra.mxu1 %v705_v41  ;;  %1047 = vmatprep.subr.bf16.mxu0 %v638_v42  ;;  %v598_v41 = vld [vmem:[#allocation5 + $0x3f8] sm:$0xff]  ;;  %v729_v42 = vunpack.c.l.s8.bf16 %v537_v34  ;;  %v786_v49 = vunpack.c.l.s8.bf16 %v566_v40 }
 0x18f   :  { %1088 = vmatprep.subr.bf16.mxu1 %v702_v44  ;;  %v790_v44 = vunpack.c.h.s8.bf16 %v566_v40  ;;  %v850_v50 = vunpack.c.l.s8.bf16 %v598_v41 }
 0x191   :  { %1048 = vmatpush2.bf16.msra.mxu0 %v637_v9  ;;  %v854_v9 = vunpack.c.h.s8.bf16 %v598_v41 }
 0x192   :  { %1089 = vmatpush2.bf16.msra.mxu1 %v701_v46  ;;  %1049 = vmatprep.subr.bf16.mxu0 %v634_v47  ;;  %v597_v46 = vld [vmem:[#allocation5 + $0x3f0] sm:$0xff]  ;;  %v789_v47 = vunpack.c.h.s8.bf16 %v565_v45 }
 0x193   :  { %1090 = vmatprep.subr.bf16.mxu1 %v698_v48  ;;  %v853_v48 = vunpack.c.h.s8.bf16 %v597_v46  ;;  %v849_v58 = vunpack.c.l.s8.bf16 %v597_v46 }
 0x195   :  { %1050 = vmatpush2.bf16.msra.mxu0 %v633_v54  ;;  %v562_v54 = vld [vmem:[#allocation5 + $0x2d8] sm:$0xff] }
 0x196   :  { %1091 = vmatpush2.bf16.msra.mxu1 %v697_v11  ;;  %1101 = vmatprep.subr.bf16.mxu0 %v758_v55  ;;  %v594_v11 = vld [vmem:[#allocation5 + $0x3d8] sm:$0xff]  ;;  %v785_v55 = vunpack.c.l.s8.bf16 %v565_v45  ;;  %v1247_v45 = vld [vmem:[#allocation7 + $0x20] sm:$0xff] }
 0x197   :  { %1142 = vmatprep.subr.bf16.mxu1 %v822_v59  ;;  %v782_v59 = vunpack.c.h.s8.bf16 %v562_v54  ;;  %v842_v1 = vunpack.c.l.s8.bf16 %v594_v11 }
 0x198   :  { %1052 = vmatmul.mubr.bf16.vlgmr.msra.gmra.mxu0 %v1982_v57  ;;  %v749_v57 = vunpack.c.h.s8.bf16 %v545_v15 }
 0x199   :  { %1093 = vmatmul.mubr.bf16.vlgmr.msra.gmra.mxu1 %v1976_v51  ;;  %1102 = vmatpush1.bf16.msra.mxu0 %v757_v61  ;;  %v746_v51 = vunpack.c.l.s8.bf16 %v546_v62  ;;  %v846_v61 = vunpack.c.h.s8.bf16 %v594_v11 }
 0x19a   :  { %1133 = vmatprep.mubr.bf16.mxu0 %v2004_v13  ;;  %1143 = vmatpush1.bf16.msra.mxu1 %v821_v16  ;;  %v574_v13 = vld [vmem:[#allocation5 + $0x338] sm:$0xff]  ;;  %v593_v16 = vld [vmem:[#allocation5 + $0x3d0] sm:$0xff] }
 0x19b   :  { %1174 = vmatprep.mubr.bf16.mxu1 %v2006_v21  ;;  %1103 = vmatprep.subr.bf16.mxu0 %v754_v12  ;;  %v742_v21 = vunpack.c.h.s8.bf16 %v542_v10  ;;  %v806_v24 = vunpack.c.h.s8.bf16 %v574_v13  ;;  %v802_v29 = vunpack.c.l.s8.bf16 %v574_v13  ;;  %v781_v12 = vunpack.c.h.s8.bf16 %v561_v14 }
 0x19c   :  { %1144 = vmatprep.subr.bf16.mxu1 %v818_v63  ;;  %v845_v62 = vunpack.c.h.s8.bf16 %v593_v16  ;;  %v778_v63 = vunpack.c.l.s8.bf16 %v562_v54  ;;  %v841_v15 = vunpack.c.l.s8.bf16 %v593_v16  ;;  %v1265_v54 = vld [vmem:[#allocation7 + $0xb0] sm:$0xff] }
 0x19d   :  { %1104 = vmatpush1.bf16.msra.mxu0 %v753_v2  ;;  %v558_v2 = vld [vmem:[#allocation5 + $0x2b8] sm:$0xff]  ;;  %v1245_v16 = vld [vmem:[#allocation7 + $0x10] sm:$0xff] }
 0x19e   :  { %1145 = vmatpush1.bf16.msra.mxu1 %v817_v3  ;;  %1105 = vmatprep.subr.bf16.mxu0 %v750_v4  ;;  %v590_v3 = vld [vmem:[#allocation5 + $0x3b8] sm:$0xff]  ;;  %v777_v4 = vunpack.c.l.s8.bf16 %v561_v14  ;;  %v770_v10 = vunpack.c.l.s8.bf16 %v558_v2  ;;  %v1264_v14 = vld [vmem:[#allocation7 + $0xa8] sm:$0xff] }
 0x19f   :  { %1146 = vmatprep.subr.bf16.mxu1 %v814_v5  ;;  %v774_v5 = vunpack.c.h.s8.bf16 %v558_v2  ;;  %v834_v13 = vunpack.c.l.s8.bf16 %v590_v3 }
 0x1a1   :  { %1106 = vmatpush1.bf16.msra.mxu0 %v749_v57  ;;  %v838_v57 = vunpack.c.h.s8.bf16 %v590_v3  ;;  %v1244_v3 = vld [vmem:[#allocation7 + $0x8] sm:$0xff] }
 0x1a2   :  { %1147 = vmatpush1.bf16.msra.mxu1 %v813_v0  ;;  %1107 = vmatprep.subr.bf16.mxu0 %v746_v51  ;;  %v589_v0 = vld [vmem:[#allocation5 + $0x3b0] sm:$0xff]  ;;  %v773_v51 = vunpack.c.h.s8.bf16 %v557_v6 }
 0x1a3   :  { %1148 = vmatprep.subr.bf16.mxu1 %v810_v60  ;;  %v837_v60 = vunpack.c.h.s8.bf16 %v589_v0  ;;  %v833_v56 = vunpack.c.l.s8.bf16 %v589_v0  ;;  %v1243_v0 = vld [vmem:[#allocation7] sm:$0xff] }
 0x1a5   :  { %1108 = vmatpush1.bf16.msra.mxu0 %v745_v22  ;;  %v554_v22 = vld [vmem:[#allocation5 + $0x298] sm:$0xff] }
 0x1a6   :  { %1149 = vmatpush1.bf16.msra.mxu1 %v809_v23  ;;  %1109 = vmatprep.subr.bf16.mxu0 %v742_v21  ;;  %v586_v23 = vld [vmem:[#allocation5 + $0x398] sm:$0xff]  ;;  %v769_v21 = vunpack.c.l.s8.bf16 %v557_v6  ;;  %v762_v30 = vunpack.c.l.s8.bf16 %v554_v22 }
 0x1a7   :  { %1150 = vmatprep.subr.bf16.mxu1 %v806_v24  ;;  %v766_v24 = vunpack.c.h.s8.bf16 %v554_v22  ;;  %v826_v31 = vunpack.c.l.s8.bf16 %v586_v23  ;;  %v1262_v6 = vld [vmem:[#allocation7 + $0x98] sm:$0xff]  ;;  %v1276_v22 = vunpack.c.l.s8.bf16 %v1244_v3 }
 0x1a9   :  { %1110 = vmatpush1.bf16.msra.mxu0 %v741_v26  ;;  %v830_v26 = vunpack.c.h.s8.bf16 %v586_v23  ;;  %v1258_v23 = vld [vmem:[#allocation7 + $0x78] sm:$0xff] }
 0x1aa   :  { %1151 = vmatpush1.bf16.msra.mxu1 %v805_v27  ;;  %1111 = vmatprep.subr.bf16.mxu0 %v738_v28  ;;  %v585_v27 = vld [vmem:[#allocation5 + $0x390] sm:$0xff]  ;;  %v765_v28 = vunpack.c.h.s8.bf16 %v553_v25 }
 0x1ab   :  { %1152 = vmatprep.subr.bf16.mxu1 %v802_v29  ;;  %v829_v29 = vunpack.c.h.s8.bf16 %v585_v27 }
 0x1ad   :  { %1112 = vmatpush1.bf16.msra.mxu0 %v737_v32  ;;  %v1250_v32 = vld [vmem:[#allocation7 + $0x38] sm:$0xff] }
 0x1ae   :  { %1153 = vmatpush1.bf16.msra.mxu1 %v801_v33  ;;  %1113 = vmatprep.subr.bf16.mxu0 %v734_v52  ;;  %v761_v33 = vunpack.c.l.s8.bf16 %v553_v25  ;;  %v825_v52 = vunpack.c.l.s8.bf16 %v585_v27  ;;  %v1290_v34 = vunpack.c.h.s8.bf16 %v1250_v32  ;;  %v1260_v25 = vld [vmem:[#allocation7 + $0x88] sm:$0xff]  ;;  %v1257_v27 = vld [vmem:[#allocation7 + $0x70] sm:$0xff] }
 0x1af   :  { %1154 = vmatprep.subr.bf16.mxu1 %v798_v35  ;;  %v1249_v35 = vld [vmem:[#allocation7 + $0x30] sm:$0xff] }
 0x1b0   :  { %v1289_v53 = vunpack.c.h.s8.bf16 %v1249_v35  ;;  %v1287_v41 = vunpack.c.l.s8.bf16 %v1249_v35  ;;  %v1303_v35 = vunpack.c.l.s8.bf16 %v1257_v27 }
 0x1b1   :  { %1114 = vmatpush1.bf16.msra.mxu0 %v733_v36  ;;  %v1288_v36 = vunpack.c.l.s8.bf16 %v1250_v32  ;;  %v1304_v32 = vunpack.c.l.s8.bf16 %v1258_v23 }
 0x1b2   :  { %1155 = vmatpush1.bf16.msra.mxu1 %v797_v37  ;;  %1115 = vmatprep.subr.bf16.mxu0 %v730_v38  ;;  %v1248_v37 = vld [vmem:[#allocation7 + $0x28] sm:$0xff] }
 0x1b3   :  { %1156 = vmatprep.subr.bf16.mxu1 %v794_v39 }
 0x1b5   :  { %1116 = vmatpush1.bf16.msra.mxu0 %v729_v42 }
 0x1b6   :  { %1157 = vmatpush1.bf16.msra.mxu1 %v793_v43  ;;  %1117 = vmatprep.subr.bf16.mxu0 %v790_v44  ;;  %v1286_v44 = vunpack.c.h.s8.bf16 %v1248_v37 }
 0x1b7   :  { %1158 = vmatprep.subr.bf16.mxu1 %v854_v9 }
 0x1b9   :  { %1118 = vmatpush2.bf16.msra.mxu0 %v789_v47  ;;  %v1285_v47 = vunpack.c.h.s8.bf16 %v1247_v45 }
 0x1ba   :  { %1159 = vmatpush2.bf16.msra.mxu1 %v853_v48  ;;  %1119 = vmatprep.subr.bf16.mxu0 %v786_v49  ;;  %v1284_v49 = vunpack.c.l.s8.bf16 %v1248_v37  ;;  %v1255_v37 = vld [vmem:[#allocation7 + $0x60] sm:$0xff] }
 0x1bb   :  { %1160 = vmatprep.subr.bf16.mxu1 %v850_v50  ;;  %v1266_v50 = vld [vmem:[#allocation7 + $0xb8] sm:$0xff] }
 0x1bc   :  { %v1322_v11 = vunpack.c.h.s8.bf16 %v1266_v50 }
 0x1bd   :  { %1120 = vmatpush2.bf16.msra.mxu0 %v785_v55  ;;  %v1321_v55 = vunpack.c.h.s8.bf16 %v1265_v54 }
 0x1be   :  { %1161 = vmatpush2.bf16.msra.mxu1 %v849_v58  ;;  %1121 = vmatprep.subr.bf16.mxu0 %v782_v59  ;;  %v1320_v58 = vunpack.c.l.s8.bf16 %v1266_v50  ;;  %v1283_v59 = vunpack.c.l.s8.bf16 %v1247_v45 }
 0x1bf   :  { %1162 = vmatprep.subr.bf16.mxu1 %v846_v61 }
 0x1c1   :  { %1122 = vmatpush2.bf16.msra.mxu0 %v781_v12  ;;  %v1319_v12 = vunpack.c.l.s8.bf16 %v1265_v54 }
 0x1c2   :  { %1163 = vmatpush2.bf16.msra.mxu1 %v845_v62  ;;  %1123 = vmatprep.subr.bf16.mxu0 %v778_v63  ;;  %v1318_v62 = vunpack.c.h.s8.bf16 %v1264_v14  ;;  %v1263_v63 = vld [vmem:[#allocation7 + $0xa0] sm:$0xff] }
 0x1c3   :  { %1164 = vmatprep.subr.bf16.mxu1 %v842_v1  ;;  %v1281_v1 = vunpack.c.h.s8.bf16 %v1245_v16 }
 0x1c5   :  { %1124 = vmatpush2.bf16.msra.mxu0 %v777_v4  ;;  %v1317_v4 = vunpack.c.h.s8.bf16 %v1263_v63 }
 0x1c6   :  { %1165 = vmatpush2.bf16.msra.mxu1 %v841_v15  ;;  %1125 = vmatprep.subr.bf16.mxu0 %v774_v5  ;;  %v1316_v15 = vunpack.c.l.s8.bf16 %v1264_v14  ;;  %v1279_v5 = vunpack.c.l.s8.bf16 %v1245_v16 }
 0x1c7   :  { %1166 = vmatprep.subr.bf16.mxu1 %v838_v57  ;;  %v1278_v57 = vunpack.c.h.s8.bf16 %v1244_v3 }
 0x1c9   :  { %1126 = vmatpush2.bf16.msra.mxu0 %v773_v51  ;;  %v1315_v51 = vunpack.c.l.s8.bf16 %v1263_v63 }
 0x1ca   :  { %1167 = vmatpush2.bf16.msra.mxu1 %v837_v60  ;;  %1127 = vmatprep.subr.bf16.mxu0 %v770_v10  ;;  %v1314_v60 = vunpack.c.h.s8.bf16 %v1262_v6  ;;  %v1261_v10 = vld [vmem:[#allocation7 + $0x90] sm:$0xff] }
 0x1cb   :  { %1168 = vmatprep.subr.bf16.mxu1 %v834_v13  ;;  %v1277_v13 = vunpack.c.h.s8.bf16 %v1243_v0 }
 0x1cd   :  { %1128 = vmatpush2.bf16.msra.mxu0 %v769_v21  ;;  %v1313_v21 = vunpack.c.h.s8.bf16 %v1261_v10 }
 0x1ce   :  { %1169 = vmatpush2.bf16.msra.mxu1 %v833_v56  ;;  %1129 = vmatprep.subr.bf16.mxu0 %v766_v24  ;;  %v1312_v56 = vunpack.c.l.s8.bf16 %v1262_v6  ;;  %v1275_v24 = vunpack.c.l.s8.bf16 %v1243_v0 }
 0x1cf   :  { %1170 = vmatprep.subr.bf16.mxu1 %v830_v26  ;;  %v1306_v26 = vunpack.c.h.s8.bf16 %v1258_v23 }
 0x1d1   :  { %1130 = vmatpush2.bf16.msra.mxu0 %v765_v28  ;;  %v1311_v28 = vunpack.c.l.s8.bf16 %v1261_v10 }
 0x1d2   :  { %1171 = vmatpush2.bf16.msra.mxu1 %v829_v29  ;;  %1131 = vmatprep.subr.bf16.mxu0 %v762_v30  ;;  %v1310_v29 = vunpack.c.h.s8.bf16 %v1260_v25  ;;  %v1259_v30 = vld [vmem:[#allocation7 + $0x80] sm:$0xff] }
 0x1d3   :  { %1172 = vmatprep.subr.bf16.mxu1 %v826_v31  ;;  %v1305_v31 = vunpack.c.h.s8.bf16 %v1257_v27 }
 0x1d5   :  { %1132 = vmatpush2.bf16.msra.mxu0 %v761_v33  ;;  %v1256_v33 = vld [vmem:[#allocation7 + $0x68] sm:$0xff] }
 0x1d6   :  { %1173 = vmatpush2.bf16.msra.mxu1 %v825_v52  ;;  %1339 = vmatprep.subr.bf16.mxu0 %v1290_v34  ;;  %v1309_v52 = vunpack.c.h.s8.bf16 %v1259_v30  ;;  %v1308_v34 = vunpack.c.l.s8.bf16 %v1260_v25  ;;  %v1300_v45 = vunpack.c.l.s8.bf16 %v1256_v33 }
 0x1d7   :  { %1380 = vmatprep.subr.bf16.mxu1 %v1322_v11  ;;  %v1271_v11 = vld [vmem:[#allocation7 + $0xe0] sm:$0xff] }
 0x1d8   :  { %1134 = vmatmul.mubr.bf16.vlgmr.msra.gmra.mxu0 %v2014_v8  ;;  %v889_v38 = vpop.f32.mrf.mxu0  ;;  %v930_v39 = vpop.f32.mrf.mxu1  ;;  %v1333_v14 = vunpack.c.h.s8.bf16 %v1271_v11  ;;  %v1331_v63 = vunpack.c.l.s8.bf16 %v1271_v11 }
 0x1d9   :  { %1175 = vmatmul.mubr.bf16.vlgmr.msra.gmra.mxu1 %v2012_v7  ;;  %v2026_v40 = vadd.f32 %v930_v39, %v889_v38  ;;  %1340 = vmatpush1.bf16.msra.mxu0 %v1289_v53  ;;  %v1246_v7 = vld [vmem:[#allocation7 + $0x18] sm:$0xff]  ;;  %v1307_v38 = vunpack.c.l.s8.bf16 %v1259_v30 }
 0x1da   :  { %v2028_v42 = vpop.f32.mrf.mxu0  ;;  %v2030_v43 = vpop.f32.mrf.mxu1  ;;  %1341 = vmatprep.subr.bf16.mxu0 %v1288_v36  ;;  %v1282_v61 = vunpack.c.h.s8.bf16 %v1246_v7  ;;  %1381 = vmatpush1.bf16.msra.mxu1 %v1321_v55  ;;  %v1280_v2 = vunpack.c.l.s8.bf16 %v1246_v7  ;;  %v1274_v53 = vld [vmem:[#allocation7 + $0xf8] sm:$0xff]  ;;  %v1302_v36 = vunpack.c.h.s8.bf16 %v1256_v33  ;;  %v1253_v7 = vld [vmem:[#allocation7 + $0x50] sm:$0xff] }
 0x1db   :  { %1382 = vmatprep.subr.bf16.mxu1 %v1320_v58  ;;  %v1338_v39 = vunpack.c.h.s8.bf16 %v1274_v53  ;;  %v1297_v55 = vunpack.c.h.s8.bf16 %v1253_v7  ;;  %v1295_v16 = vunpack.c.l.s8.bf16 %v1253_v7 }
 0x1dc   :  { %v893_v9 = vpop.f32.mrf.mxu0  ;;  %v934_v46 = vpop.f32.mrf.mxu1 }
 0x1dd   :  { %1342 = vmatpush1.bf16.msra.mxu0 %v1287_v41  ;;  %v1273_v41 = vld [vmem:[#allocation7 + $0xf0] sm:$0xff]  ;;  %v1254_v9 = vld [vmem:[#allocation7 + $0x58] sm:$0xff] }
 0x1de   :  { %v894_v8 = vpop.f32.mrf.mxu0  ;;  %v935_v48 = vpop.f32.mrf.mxu1  ;;  %1343 = vmatprep.subr.bf16.mxu0 %v1286_v44  ;;  %1383 = vmatpush1.bf16.msra.mxu1 %v1319_v12  ;;  %v1301_v44 = vunpack.c.h.s8.bf16 %v1255_v37  ;;  %v1337_v46 = vunpack.c.h.s8.bf16 %v1273_v41  ;;  %v1335_v50 = vunpack.c.l.s8.bf16 %v1273_v41  ;;  %v1296_v58 = vunpack.c.l.s8.bf16 %v1254_v9 }
 0x1df   :  { %1384 = vmatprep.subr.bf16.mxu1 %v1318_v62  ;;  %v1299_v8 = vunpack.c.l.s8.bf16 %v1255_v37  ;;  %v1272_v48 = vld [vmem:[#allocation7 + $0xe8] sm:$0xff]  ;;  %v1251_v62 = vld [vmem:[#allocation7 + $0x40] sm:$0xff] }
 0x1e0   :  { %v1334_v54 = vunpack.c.h.s8.bf16 %v1272_v48  ;;  %v1291_v3 = vunpack.c.l.s8.bf16 %v1251_v62 }
 0x1e1   :  { %1344 = vmatpush1.bf16.msra.mxu0 %v1285_v47  ;;  %v1336_v47 = vunpack.c.l.s8.bf16 %v1274_v53  ;;  %v1267_v53 = vld [vmem:[#allocation7 + $0xc0] sm:$0xff] }
 0x1e2   :  { %1345 = vmatprep.subr.bf16.mxu0 %v1284_v49  ;;  %1385 = vmatpush1.bf16.msra.mxu1 %v1317_v4  ;;  %v1298_v49 = vunpack.c.h.s8.bf16 %v1254_v9  ;;  %v2035_v4 = vld [vmem:[%s2127_s5] sm:$0xf]  ;;  %v1325_v37 = vunpack.c.h.s8.bf16 %v1267_v53 }
 0x1e3   :  { %1386 = vmatprep.subr.bf16.mxu1 %v1316_v15  ;;  %v1270_v15 = vld [vmem:[#allocation7 + $0xd8] sm:$0xff] }
 0x1e4   :  { %v1330_v0 = vunpack.c.h.s8.bf16 %v1270_v15 }
 0x1e5   :  { %1346 = vmatpush1.bf16.msra.mxu0 %v1283_v59  ;;  %v1252_v59 = vld [vmem:[#allocation7 + $0x48] sm:$0xff] }
 0x1e6   :  { %1347 = vmatprep.subr.bf16.mxu0 %v1282_v61  ;;  %1387 = vmatpush1.bf16.msra.mxu1 %v1315_v51  ;;  %v1332_v61 = vunpack.c.l.s8.bf16 %v1272_v48  ;;  %v1294_v12 = vunpack.c.h.s8.bf16 %v1252_v59  ;;  %v1269_v51 = vld [vmem:[#allocation7 + $0xd0] sm:$0xff] }
 0x1e7   :  { %1388 = vmatprep.subr.bf16.mxu1 %v1314_v60  ;;  %v933_v60 = vadd.f32 %v2030_v43, %v2028_v42  ;;  %v1328_v43 = vunpack.c.l.s8.bf16 %v1270_v15  ;;  %v1327_v30 = vunpack.c.l.s8.bf16 %v1269_v51 }
 0x1e9   :  { %1348 = vmatpush1.bf16.msra.mxu0 %v1281_v1  ;;  %v1293_v1 = vunpack.c.h.s8.bf16 %v1251_v62 }
 0x1ea   :  { %1349 = vmatprep.subr.bf16.mxu0 %v1280_v2  ;;  %1389 = vmatpush1.bf16.msra.mxu1 %v1313_v21  ;;  %v1292_v2 = vunpack.c.l.s8.bf16 %v1252_v59 }
 0x1eb   :  { %1390 = vmatprep.subr.bf16.mxu1 %v1312_v56 }
 0x1ed   :  { %1350 = vmatpush1.bf16.msra.mxu0 %v1279_v5 }
 0x1ee   :  { %1351 = vmatprep.subr.bf16.mxu0 %v1278_v57  ;;  %1391 = vmatpush1.bf16.msra.mxu1 %v1311_v28  ;;  %v2040_v57 = vld [vmem:[%s2128_s6] sm:$0xf] }
 0x1ef   :  { %1392 = vmatprep.subr.bf16.mxu1 %v1310_v29  ;;  %v1218_v29 = vrot.slane %v2040_v57, %v1955_v19 }
 0x1f1   :  { %1352 = vmatpush1.bf16.msra.mxu0 %v1277_v13  ;;  %v1188_v13 = vrot.slane %v2035_v4, %v1949_v17 }
 0x1f2   :  { %1353 = vmatprep.subr.bf16.mxu0 %v1276_v22  ;;  %1393 = vmatpush1.bf16.msra.mxu1 %v1309_v52  ;;  %v1329_v22 = vunpack.c.h.s8.bf16 %v1269_v51 }
 0x1f3   :  { %1394 = vmatprep.subr.bf16.mxu1 %v1308_v34  ;;  %v1268_v34 = vld [vmem:[#allocation7 + $0xc8] sm:$0xff] }
 0x1f4   :  { %v1324_v41 = vunpack.c.l.s8.bf16 %v1268_v34 }
 0x1f5   :  { %1354 = vmatpush1.bf16.msra.mxu0 %v1275_v24  ;;  %v1214_v24 = vrot.slane %v2040_v57, %v1949_v17 }
 0x1f6   :  { %1355 = vmatprep.subr.bf16.mxu0 %v1306_v26  ;;  %1395 = vmatpush1.bf16.msra.mxu1 %v1307_v38  ;;  %v1192_v26 = vrot.slane %v2035_v4, %v1955_v19 }
 0x1f7   :  { %1396 = vmatprep.subr.bf16.mxu1 %v1338_v39 }
 0x1f9   :  { %1356 = vmatpush2.bf16.msra.mxu0 %v1305_v31 }
 0x1fa   :  { %1357 = vmatprep.subr.bf16.mxu0 %v1304_v32  ;;  %1397 = vmatpush2.bf16.msra.mxu1 %v1337_v46 }
 0x1fb   :  { %1398 = vmatprep.subr.bf16.mxu1 %v1336_v47 }
 0x1fd   :  { %1358 = vmatpush2.bf16.msra.mxu0 %v1303_v35  ;;  %v1326_v35 = vunpack.c.h.s8.bf16 %v1268_v34 }
 0x1fe   :  { %1359 = vmatprep.subr.bf16.mxu0 %v1302_v36  ;;  %1399 = vmatpush2.bf16.msra.mxu1 %v1335_v50 }
 0x1ff   :  { %1400 = vmatprep.subr.bf16.mxu1 %v1334_v54 }
 0x201   :  { %1360 = vmatpush2.bf16.msra.mxu0 %v1301_v44  ;;  %v1323_v44 = vunpack.c.l.s8.bf16 %v1267_v53 }
 0x202   :  { %1361 = vmatprep.subr.bf16.mxu0 %v1300_v45  ;;  %1401 = vmatpush2.bf16.msra.mxu1 %v1333_v14 }
 0x203   :  { %1402 = vmatprep.subr.bf16.mxu1 %v1332_v61 }
 0x205   :  { %1362 = vmatpush2.bf16.msra.mxu0 %v1299_v8 }
 0x206   :  { %1363 = vmatprep.subr.bf16.mxu0 %v1298_v49  ;;  %1403 = vmatpush2.bf16.msra.mxu1 %v1331_v63  ;;  %v1455_v63 = vld [vmem:[%s2132_s10 + $0x10] sm:$0xff] }
 0x207   :  { %1404 = vmatprep.subr.bf16.mxu1 %v1330_v0  ;;  %v1465_v15 = vunpack.c.l.s8.bf16 %v1455_v63 }
 0x209   :  { %1364 = vmatpush2.bf16.msra.mxu0 %v1297_v55  ;;  %v1460_v55 = vld [vmem:[%s2132_s10 + $0x38] sm:$0xff] }
 0x20a   :  { %1365 = vmatprep.subr.bf16.mxu0 %v1296_v58  ;;  %1405 = vmatpush2.bf16.msra.mxu1 %v1329_v22  ;;  %v1456_v58 = vld [vmem:[%s2132_s10 + $0x18] sm:$0xff]  ;;  %v1476_v59 = vunpack.c.h.s8.bf16 %v1460_v55  ;;  %v1475_v61 = vunpack.c.l.s8.bf16 %v1460_v55  ;;  %v1196_v22 = vrot.slane %v2035_v4, %v1952_v18 }
 0x20b   :  { %1406 = vmatprep.subr.bf16.mxu1 %v1328_v43  ;;  %v1468_v14 = vunpack.c.h.s8.bf16 %v1456_v58 }
 0x20d   :  { %1366 = vmatpush2.bf16.msra.mxu0 %v1295_v16  ;;  %v1459_v16 = vld [vmem:[%s2132_s10 + $0x30] sm:$0xff] }
 0x20e   :  { %1367 = vmatprep.subr.bf16.mxu0 %v1294_v12  ;;  %1407 = vmatpush2.bf16.msra.mxu1 %v1327_v30  ;;  %v1467_v12 = vunpack.c.l.s8.bf16 %v1456_v58  ;;  %v1474_v62 = vunpack.c.h.s8.bf16 %v1459_v16 }
 0x20f   :  { %1408 = vmatprep.subr.bf16.mxu1 %v1326_v35 }
 0x211   :  { %1368 = vmatpush2.bf16.msra.mxu0 %v1293_v1  ;;  %v1466_v1 = vunpack.c.h.s8.bf16 %v1455_v63 }
 0x212   :  { %1369 = vmatprep.subr.bf16.mxu0 %v1292_v2  ;;  %1409 = vmatpush2.bf16.msra.mxu1 %v1325_v37  ;;  %v1473_v2 = vunpack.c.l.s8.bf16 %v1459_v16 }
 0x213   :  { %1410 = vmatprep.subr.bf16.mxu1 %v1324_v41  ;;  %v1453_v41 = vld [vmem:[%s2132_s10] sm:$0xff] }
 0x215   :  { %1370 = vmatpush2.bf16.msra.mxu0 %v1291_v3  ;;  %v1458_v3 = vld [vmem:[%s2132_s10 + $0x28] sm:$0xff] }
 0x216   :  { %1411 = vmatpush2.bf16.msra.mxu1 %v1323_v44  ;;  %1655 = vmatprep.subr.bf16.mxu0 %v1476_v59  ;;  %v1462_v44 = vunpack.c.h.s8.bf16 %v1453_v41 }
 0x218   :  { %v971_v5 = vpop.f32.mrf.mxu0  ;;  %v1012_v6 = vpop.f32.mrf.mxu1 }
 0x219   :  { %v972_v10 = vadd.f32 %v971_v5, %v2026_v40  ;;  %v1472_v5 = vunpack.c.h.s8.bf16 %v1458_v3 }
 0x21a   :  { %v973_v23 = vpop.f32.mrf.mxu0  ;;  %v1014_v21 = vpop.f32.mrf.mxu1 }
 0x21b   :  { %v1013_v56 = vadd.f32 %v1012_v6, %v972_v10  ;;  %v974_v25 = vadd.f32 %v973_v23, %v933_v60  ;;  %v1454_v6 = vld [vmem:[%s2132_s10 + $0x8] sm:$0xff] }
 0x21c   :  { %v975_v27 = vpop.f32.mrf.mxu0  ;;  %v1016_v42 = vpop.f32.mrf.mxu1  ;;  %v1464_v0 = vunpack.c.h.s8.bf16 %v1454_v6  ;;  %v1463_v37 = vunpack.c.l.s8.bf16 %v1454_v6 }
 0x21d   :  { %v1205_v40 = vmul.f32 %v1188_v13, %v1013_v56  ;;  %v1015_v28 = vadd.f32 %v1014_v21, %v974_v25  ;;  %v1222_v56 = vrot.slane %v2040_v57, %v1952_v18 }
 0x21e   :  { %v976_v31 = vpop.f32.mrf.mxu0  ;;  %v1017_v32 = vpop.f32.mrf.mxu1 }
 0x21f   :  { %v1231_v33 = vadd.f32 %v1214_v24, %v1205_v40  ;;  %v1206_v52 = vmul.f32 %v1192_v26, %v1015_v28  ;;  %v1200_v26 = vrot.slane %v2035_v4, %v1958_v20  ;;  %v1226_v40 = vrot.slane %v2040_v57, %v1958_v20  ;;  %v1457_v20 = vld [vmem:[%s2132_s10 + $0x20] sm:$0xff] }
 0x221   :  { %v1232_v36 = vadd.f32 %v1218_v29, %v1206_v52  ;;  %v1235_v38 = vmax.f32 %v1231_v33, 0.0 }
 0x223   :  { %v1236_v39 = vmax.f32 %v1232_v36, 0.0  ;;  %v1239_v9 = vpack.c.bf16 %v1235_v38, %v1235_v38  ;;  %v1471_v36 = vunpack.c.l.s8.bf16 %v1458_v3 }
 0x225   :  { %v1240_v45 = vpack.c.bf16 %v1236_v39, %v1236_v39  ;;  %v1470_v39 = vunpack.c.h.s8.bf16 %v1457_v20 }
 0x227   :  { %1371 = vmatprep.mubr.bf16.mxu0 %v1240_v45  ;;  %v1469_v45 = vunpack.c.l.s8.bf16 %v1457_v20 }
 0x228   :  { %1372 = vmatmul.mubr.bf16.vlgmr.msra.gmra.mxu0 %v1239_v9  ;;  %v1461_v9 = vunpack.c.l.s8.bf16 %v1453_v41 }
 0x229   :  { %1656 = vmatpush3.bf16.msra.mxu0 %v1468_v14 }
 0x22a   :  { %1657 = vmatprep.subr.bf16.mxu0 %v1475_v61 }
 0x22d   :  { %1658 = vmatpush3.bf16.msra.mxu0 %v1467_v12 }
 0x22e   :  { %1659 = vmatprep.subr.bf16.mxu0 %v1474_v62 }
 0x231   :  { %1660 = vmatpush3.bf16.msra.mxu0 %v1466_v1 }
 0x232   :  { %1661 = vmatprep.subr.bf16.mxu0 %v1473_v2 }
 0x235   :  { %1662 = vmatpush3.bf16.msra.mxu0 %v1465_v15 }
 0x236   :  { %1663 = vmatprep.subr.bf16.mxu0 %v1472_v5  ;;  %v1710_v5 = vld [vmem:[%s2135_s13] sm:$0xff]  }
 0x239   :  { %1664 = vmatpush3.bf16.msra.mxu0 %v1464_v0 }
 0x23a   :  { %1665 = vmatprep.subr.bf16.mxu0 %v1471_v36 }
 0x23d   :  { %1666 = vmatpush3.bf16.msra.mxu0 %v1463_v37 }
 0x23e   :  { %1667 = vmatprep.subr.bf16.mxu0 %v1470_v39 }
 0x241   :  { %1668 = vmatpush3.bf16.msra.mxu0 %v1462_v44 }
 0x242   :  { %1669 = vmatprep.subr.bf16.mxu0 %v1469_v45 }
 0x245   :  { %1670 = vmatpush3.bf16.msra.mxu0 %v1461_v9 }
 0x258   :  { %v1053_v46 = vpop.f32.mrf.mxu0 }
 0x259   :  { %v1094_v47 = vpop.f32.mrf.mxu1 }
 0x25a   :  { %v1095_v8 = vadd.f32 %v1094_v47, %v1053_v46  ;;  %v1055_v48 = vpop.f32.mrf.mxu0  ;;  %v1707_v46 = vld [vmem:[%s2135_s13 + $0x18] sm:$0xff]   ;;  %v1811_v47 = vmov 0.0  }
 0x25b   :  { %v1096_v49 = vpop.f32.mrf.mxu1  ;;  %1682 = vmatprep.subr.bf16.mxu1 %v1811_v47 }
 0x25c   :  { %v1057_v7 = vpop.f32.mrf.mxu0  ;;  %v1097_v60 = vadd.f32 %v1096_v49, %v1055_v48  ;;  %v1435_v48 = vld [vmem:[%s2131_s9] sm:$0x3] }
 0x25d   :  { %v1098_v50 = vpop.f32.mrf.mxu1  ;;  %v1444_v14 = vrot.slane %v1435_v48, %v1955_v19 }
 0x25e   :  { %v1058_v54 = vpop.f32.mrf.mxu0 }
 0x25f   :  { %v1099_v11 = vpop.f32.mrf.mxu1  ;;  %v1440_v54 = vrot.slane %v1435_v48, %v1949_v17 }
 0x298   :  { %v1135_v51 = vpop.f32.mrf.mxu0 }
 0x299   :  { %v1136_v10 = vadd.f32 %v1135_v51, %v1095_v8  ;;  %v1176_v13 = vpop.f32.mrf.mxu1  ;;  %v1421_v8 = vld [vmem:[%s2130_s8] sm:$0x3] }
 0x29a   :  { %v1137_v23 = vpop.f32.mrf.mxu0  ;;  %v1426_v49 = vrot.slane %v1421_v8, %v1949_v17  ;;  %v1430_v11 = vrot.slane %v1421_v8, %v1955_v19  ;;  %v1708_v17 = vld [vmem:[%s2135_s13 + $0x10] sm:$0xff]   ;;  %v1709_v19 = vld [vmem:[%s2135_s13 + $0x8] sm:$0xff]   ;;  %v1647_v51 = vld [vmem:[%s2133_s11] ss:$0 sm:$0xff]  ;;  %s1813_s11 = smov [#allocation8]  }
 0x29b   :  { %v1177_v21 = vadd.f32 %v1176_v13, %v1136_v10  ;;  %v1138_v24 = vadd.f32 %v1137_v23, %v1097_v60  ;;  %v1178_v25 = vpop.f32.mrf.mxu1  ;;  %v1648_v10 = vld [vmem:[%s2134_s12] ss:$0 sm:$0xff]  ;;  %s1637_s12 = sshll.u32 %s1813_s11, 4  ;;  %s1638_s12 = int_to_ptr.vmem [resolvable:$true] %s1637_s12 }
 0x29c   :  { %v1139_v27 = vpop.f32.mrf.mxu0  ;;  %p1780_p2 = scmp.lt.s32.totalorder %s1638_s12, %s1638_s12 }
 0x29d   :  { %v1207_v42 = vmul.f32 %v1196_v22, %v1177_v21  ;;  %v1179_v43 = vadd.f32 %v1178_v25, %v1138_v24  ;;  %v1180_v28 = vpop.f32.mrf.mxu1  ;;  %v1649_v25 = vld [vmem:[%s2136_s14] ss:$0 sm:$0xff]  ;;  %s1775_s14 = scalar_lea.vmem %s1638_s12, 128 }
 0x29e   :  { %v1140_v29 = vpop.f32.mrf.mxu0  ;;  %p1776_p1 = scmp.ne.s32.totalorder %s1638_s12, %s1775_s14  ;;  %p1781_p3 = scmp.lt.s32.totalorder %s1775_s14, %s1775_s14 }
 0x29f   :  { %v1233_v30 = vadd.f32 %v1222_v56, %v1207_v42  ;;  %v1208_v31 = vmul.f32 %v1200_v26, %v1179_v43  ;;  %v1181_v32 = vpop.f32.mrf.mxu1 }
 0x2a0   :  { %p1782_p4 = por %p1781_p3, %p1780_p2 }
 0x2a1   :  { %v1234_v33 = vadd.f32 %v1226_v40, %v1208_v31  ;;  %v1237_v52 = vmax.f32 %v1233_v30, 0.0 }
 0x2a2   :  { %p1783_p5 = pnand %p1782_p4, %p1776_p1 }
 0x2a3   :  { %v1238_v34 = vmax.f32 %v1234_v33, 0.0  ;;  %v1241_v35 = vpack.c.bf16 %v1237_v52, %v1237_v52 }
 0x2a5   :  { %v1242_v18 = vpack.c.bf16 %v1238_v34, %v1238_v34 }
 0x2a7   :  { %1412 = vmatprep.mubr.bf16.mxu1 %v1242_v18 }
 0x2a8   :  { %1413 = vmatmul.mubr.bf16.vlgmr.msra.gmra.mxu1 %v1241_v35 }
 0x2a9   :  { %1683 = vmatpush3.bf16.msra.mxu1 %v1707_v46  ;;  %1690 = vmatprep.mubr.msk.bf16.mxu1 %vm1812_vm0, %v1811_v47 }
 0x2aa   :  { %1684 = vmatprep.subr.bf16.mxu1 %v1811_v47 }
 0x2ad   :  { %1685 = vmatpush3.bf16.msra.mxu1 %v1708_v17 }
 0x2ae   :  { %1686 = vmatprep.subr.bf16.mxu1 %v1811_v47 }
 0x2b1   :  { %1687 = vmatpush3.bf16.msra.mxu1 %v1709_v19 }
 0x2b2   :  { %1688 = vmatprep.subr.bf16.mxu1 %v1811_v47 }
 0x2b5   :  { %1689 = vmatpush3.bf16.msra.mxu1 %v1710_v5 }
 0x2e8   :  { %v1373_v53 = vpop.f32.mrf.mxu0 }
 0x2ea   :  { %v1375_v4 = vpop.f32.mrf.mxu0 }
 0x2ec   :  { %v1377_v38 = vpop.f32.mrf.mxu0 }
 0x2ee   :  { %v1378_v57 = vpop.f32.mrf.mxu0 }
 0x368   :  { %v1414_v7 = vpop.f32.mrf.mxu1 }
 0x369   :  { %v1415_v50 = vadd.f32 %v1414_v7, %v1373_v53 }
 0x36a   :  { %v1416_v55 = vpop.f32.mrf.mxu1 }
 0x36b   :  { %v1433_v58 = vmul.f32 %v1426_v49, %v1415_v50  ;;  %v1417_v59 = vadd.f32 %v1416_v55, %v1375_v4 }
 0x36c   :  { %v1418_v61 = vpop.f32.mrf.mxu1 }
 0x36d   :  { %v1447_v16 = vadd.f32 %v1440_v54, %v1433_v58  ;;  %v1434_v12 = vmul.f32 %v1430_v11, %v1417_v59 }
 0x36e   :  { %v1419_v62 = vpop.f32.mrf.mxu1 }
 0x36f   :  { %v1448_v63 = vadd.f32 %v1444_v14, %v1434_v12  ;;  %v1449_v1 = vmax.f32 %v1447_v16, 0.0 }
 0x371   :  { %v1450_v2 = vmax.f32 %v1448_v63, 0.0  ;;  %v1451_v15 = vpack.c.bf16 %v1449_v1, %v1449_v1 }
 0x373   :  { %v1452_v3 = vpack.c.bf16 %v1450_v2, %v1450_v2 }
 0x375   :  { %1509 = vmatprep.mubr.bf16.mxu0 %v1452_v3 }
 0x376   :  { %1510 = vmatmul.mubr.bf16.vlgmr.msra.gmra.mxu0 %v1451_v15 }
 0x436   :  { %v1671_v6 = vpop.f32.mrf.mxu0 }
 0x438   :  { %v1672_v0 = vpop.f32.mrf.mxu0 }
 0x439   :  { %v1673_v60 = vadd.f32 %v1672_v0, %v1671_v6 }
 0x43a   :  { %v1674_v13 = vpop.f32.mrf.mxu0 }
 0x43b   :  { %v1524_v22 = vmul.f32 %v1673_v60, %v1647_v51 }
 0x43c   :  { %v1675_v23 = vpop.f32.mrf.mxu0 }
 0x43d   :  { %v1532_v21 = vadd.f32 %v1648_v10, %v1524_v22 }
 0x43f   :  { %v1533_v56 = vmax.f32 %v1532_v21, 0.0 }
 0x441   :  { %v1534_v24 = vpack.c.bf16 %v1533_v56, %v1533_v56 }
 0x443   :  { %1691 = vmatmul.mubr.msk.bf16.vlgmr.msra.gmra.mxu1 %vm1574_vm1, %v1534_v24 }
 0x503   :  { %v1612_v26 = vpop.f32.mrf.mxu1 }
 0x504   :  { %v1613_v27 = vadd.f32 %v1649_v25, %v1612_v26 }
 0x505   :  { %v1692_v42 = vpop.f32.mrf.mxu1 }
 0x506   :  { %v1619_v43 = vsel %vm1618_vm2, %v1613_v27, -inf }
 0x507   :  { %1620 = vmax.xlane.f32.xlu0 %v1619_v43  ;;  %v1615_v40 = vpop.f32.mrf.mxu1 }
 0x509   :  { %v1693_v28 = vpop.f32.mrf.mxu1 }
 0x590   :  { %v1621_v29 = vpop.xlane.xlu0 %1620 }
 0x591   :  { %v1622_v30 = vsub.f32 %v1613_v27, %v1621_v29 }
 0x593   :  { %v1623_v31 = vmul.f32 1.442695, %v1622_v30 }
 0x595   :  { %1711 = vpow2.f32 %v1623_v31 }
 0x5a2   :  { %v1712_v32 = vpop.eup %1711 }
 0x5a3   :  { %v1625_v33 = vsel %vm1618_vm2, %v1712_v32, 0.0 }
 0x5a4   :  { %1626 = vadd.xlane.f32.xlu0 %v1625_v33 }
 0x62d   :  { %v1627_v52 = vpop.xlane.xlu0 %1626 }
 0x62e   :  { %1713 = vrcp.f32 %v1627_v52 }
 0x63b   :  { %v1714_v34 = vpop.eup %1713 }
 0x63c   :  { %v1629_v18 = vmul.f32 %v1714_v34, %v1712_v32 }
 0x63e   :  { %1630 = vst.msk [vmem:[#allocation8] sm:$0xff] %vm1618_vm2, %v1629_v18 }
 0x63f   :  { %1786 = shalt.err (!%p1783_p5)
}
 0x640   :  { %1640 = dma.vmem_to_hbm [thread:$0]  %s1638_s12, 128, %s2137_s15, [#allocation4]  }
 0x641   :  { %1799 = dma.done.wait [#allocation4], 128  }
 0x642   :  { %1800 = vsyncadd [#allocation4], 4294967168 }
 0x643   :  { %1644 = vsyncpa [#allocation3], 1 }
 0x644   :  { %1645 = vsyncpa [#allocation6], 1 }
 0x645   :  { %1646 = vsyncpa [#allocation4], 1 }

</bundles_post_ra>
